<compile_context>
chip_gen: v5e
topology: v5e:2x2
jax: 0.10.0
libtpu: 0.0.40
codegen_flags: <defaults>
</compile_context>

<pallas_src>
import functools

import jax
import jax.numpy as jnp
from jax.experimental import pallas as pl
from jax.experimental.pallas import tpu as pltpu


def _round_up(x, m):
    return (x + m - 1) // m * m


# ------------------------------------ Pallas kernel ------------------------------------
def _lstm_layer_kernel(x_ref, wih_ref, whh_ref, b_ref, out_ref, hfin_ref, gates_sc,
                       *, seq_len, batch_pad, hidden, hidden_pad, gate_pad, num_dir):
    """One (possibly bidirectional) LSTM layer; both directions fused in one invocation.

    x_ref    : (T*B, D_in)          bf16/f32  time-major, batch-padded, flattened input
    wih_ref  : (D_in, num_dir*GP)   bf16      per-direction W_ih^T, packed gate columns
    whh_ref  : (num_dir, HP, GP)    bf16      per-direction W_hh^T, packed gate columns
    b_ref    : (num_dir, 1, GP)     f32       b_ih + b_hh, packed gate columns
    out_ref  : (T*B, num_dir*HP)    f32       hidden sequence, direction d at cols [d*HP, ...)
    hfin_ref : (num_dir, B, HP)     f32       final hidden state per direction
    gates_sc : (T*B, num_dir*GP)    f32       hoisted input projection (VMEM scratch)

    Packed layout: gate k occupies lanes [k*H, (k+1)*H) of its GP-wide block (PyTorch order
    i,f,g,o).  h/c are carried GP lanes wide; only lanes [0,H) are meaningful — junk lanes are
    killed by the zero rows >= H of W_hh / the next layer's W_ih and by the final slice.
    """
    T, B, H, HP, GP = seq_len, batch_pad, hidden, hidden_pad, gate_pad

    # (1) Hoisted input projection for every timestep and BOTH directions: one MXU matmul.
    gates_sc[...] = jnp.dot(x_ref[...].astype(jnp.bfloat16), wih_ref[...],
                            preferred_element_type=jnp.float32)

    # Loop-invariant operands, hoisted once (JAX does not CSE broadcasts inside the loop).
    whh = [whh_ref[d] for d in range(num_dir)]                        # (HP, GP) bf16 each
    bias = [jnp.broadcast_to(b_ref[d], (B, GP)) for d in range(num_dir)]
    lane = jax.lax.broadcasted_iota(jnp.int32, (B, GP), 1)
    g_lane = jnp.logical_and(lane >= 2 * H, lane < 3 * H)             # tanh (cell) gate lanes
    pre = jnp.where(g_lane, 1.0, 0.5).astype(jnp.float32)             # z pre-scale
    post = jnp.where(g_lane, 0.0, 0.5).astype(jnp.float32)            # sigmoid post-offset

    def activate(z):
        # ONE EUP push for all four gates: g lanes -> tanh(z); i/f/o lanes ->
        # sigmoid(z) = 0.5*tanh(0.5*z) + 0.5.
        t = jnp.tanh(z * pre)
        return t * pre + post

    def step(i, carry):
        new_carry = []
        for d in range(num_dir):                                      # static unroll: interleave
            h, c = carry[2 * d], carry[2 * d + 1]                     # (B, GP) f32
            # Forward walks t = i; backward walks t = T-1-i (static per direction, no select).
            t_idx = i if d == 0 else (T - 1) - i
            row = pl.multiple_of(t_idx * B, B)

            z = (gates_sc[pl.ds(row, B), pl.ds(d * GP, GP)]
                 + jnp.dot(h[:, :HP].astype(jnp.bfloat16), whh[d],
                           preferred_element_type=jnp.float32)
                 + bias[d])
            a = activate(z)                                           # [ i | f | g | o ] packed
            f_al = pltpu.roll(a, shift=GP - H, axis=1)                # forget gate -> lanes [0,H)
            g_al = pltpu.roll(a, shift=GP - 2 * H, axis=1)            # cell gate   -> lanes [0,H)
            o_al = pltpu.roll(a, shift=GP - 3 * H, axis=1)            # output gate -> lanes [0,H)

            c_new = f_al * c + a * g_al                               # a holds i at lanes [0,H)
            h_new = o_al * jnp.tanh(c_new)

            # Store this step's hidden state straight into the VMEM-resident output.
            out_ref[pl.ds(row, B), pl.ds(d * HP, HP)] = h_new[:, :HP]
            new_carry += [h_new, c_new]
        return tuple(new_carry)

    zeros = jnp.zeros((B, GP), jnp.float32)
    final = jax.lax.fori_loop(0, T, step, tuple([zeros] * (2 * num_dir)),
                              unroll=True if T <= 32 else 8)

    for d in range(num_dir):
        hfin_ref[d] = final[2 * d][:, :HP]


def _lstm_layer(x_flat, wih_both, whh_all, bias_all, *, seq_len, batch_pad,
                hidden, hidden_pad, gate_pad, num_dir):
    """Run one (possibly bidirectional) LSTM layer with a single, grid-less pallas_call."""
    tb = x_flat.shape[0]

    # Explicit scoped-VMEM budget: inputs, outputs and the hoisted gates scratch are all
    # resident at once; default limits (16 MiB v5e / 32 MiB v6e,v7x) can be too small for long T.
    needed = (x_flat.size * x_flat.dtype.itemsize
              + wih_both.size * 2 + whh_all.size * 2 + bias_all.size * 4
              + tb * num_dir * hidden_pad * 4            # out_seq
              + num_dir * batch_pad * hidden_pad * 4     # h_fin
              + tb * num_dir * gate_pad * 4)             # gates scratch
    vmem_limit = int(min(100 * 2**20, max(32 * 2**20, 2 * needed)))

    kernel = functools.partial(_lstm_layer_kernel, seq_len=seq_len, batch_pad=batch_pad,
                               hidden=hidden, hidden_pad=hidden_pad, gate_pad=gate_pad,
                               num_dir=num_dir)

    out_seq, h_fin = pl.pallas_call(
        kernel,
        out_shape=(
            jax.ShapeDtypeStruct((tb, num_dir * hidden_pad), jnp.float32),
            jax.ShapeDtypeStruct((num_dir, batch_pad, hidden_pad), jnp.float32),
        ),
        scratch_shapes=[pltpu.VMEM((tb, num_dir * gate_pad), jnp.float32)],
        compiler_params=pltpu.CompilerParams(vmem_limit_bytes=vmem_limit),
    )(x_flat, wih_both, whh_all, bias_all)
    return out_seq, h_fin


# ------------------------------- parameter preparation ---------------------------------
def _prep_layer_params(params, layer, num_dir, hidden, hidden_pad, gate_pad):
    """Pack transposed, gate-packed, padded per-direction weights for one layer (off hot path)."""
    H, HP, GP = hidden, hidden_pad, gate_pad
    wih_cols, whhs, biases = [], [], []
    for d in range(num_dir):
        w_ih, w_hh, b_ih, b_hh = params[(layer, d)]
        wih_t = jnp.asarray(w_ih, jnp.float32).T                     # (D_in, 4H) cols = [i|f|g|o]
        whh_t = jnp.asarray(w_hh, jnp.float32).T                     # (H, 4H)
        bias = (jnp.asarray(b_ih, jnp.float32)
                + jnp.asarray(b_hh, jnp.float32)).reshape(1, 4 * H)

        wih_p = jnp.zeros((wih_t.shape[0], GP), jnp.float32).at[:, :4 * H].set(wih_t)
        if layer > 0:
            # Inputs of layer > 0 are the previous layer's per-direction HP-wide hidden blocks:
            # remap input-feature rows of direction e from e*H to e*HP (zero rows kill the
            # junk/padding lanes of the previous layer's output).
            remap = jnp.zeros((num_dir * HP, GP), jnp.float32)
            for e in range(num_dir):
                remap = remap.at[e * HP:e * HP + H, :].set(wih_p[e * H:(e + 1) * H, :])
            wih_p = remap
        whh_p = jnp.zeros((HP, GP), jnp.float32).at[:H, :4 * H].set(whh_t)
        bias_p = jnp.zeros((1, GP), jnp.float32).at[:, :4 * H].set(bias)

        wih_cols.append(wih_p.astype(jnp.bfloat16))                  # bf16 MXU operands
        whhs.append(whh_p.astype(jnp.bfloat16))
        biases.append(bias_p)                                        # bias stays f32
    wih_both = jnp.concatenate(wih_cols, axis=1)                     # (D_in_pad, num_dir*GP)
    return wih_both, jnp.stack(whhs), jnp.stack(biases)


# ----------------------------------- encoder forward ------------------------------------
def lstm_encoder_forward(x, params, hidden_size, num_layers, bidirectional):
    """Replicates LSTMEncoder.forward. x: (B, T, D). Returns hn: (B, H) or (B, 2H)."""
    B, T, _ = x.shape
    num_dir = 2 if bidirectional else 1
    H = hidden_size
    HP = _round_up(H, 128)             # per-direction hidden slab width (lane-dense)
    GP = _round_up(4 * H, 128)         # packed gate block width
    B_pad = _round_up(B, 8)            # sublane-aligned batch

    # (B, T, D) -> time-major (T, B_pad, D) -> flat (T*B_pad, D); bf16 MXU operand for layer 0.
    x_tm = jnp.transpose(x, (1, 0, 2))
    x_tm = jnp.pad(x_tm, ((0, 0), (0, B_pad - B), (0, 0)))
    layer_in = x_tm.reshape(T * B_pad, x.shape[-1]).astype(jnp.bfloat16)

    h_fin = None
    for layer in range(num_layers):
        wih_both, whh_all, bias_all = _prep_layer_params(params, layer, num_dir, H, HP, GP)
        layer_in, h_fin = _lstm_layer(layer_in, wih_both, whh_all, bias_all,
                                      seq_len=T, batch_pad=B_pad, hidden=H,
                                      hidden_pad=HP, gate_pad=GP, num_dir=num_dir)
        # TODO(synk): inter-layer dropout (training mode only) intentionally omitted.

    if bidirectional:
        return jnp.concatenate([h_fin[0, :B, :H], h_fin[1, :B, :H]], axis=1)
    return h_fin[0, :B, :H]


# ----------------------- pure-JAX reference (for verification) -----------------------
def _ref_layer_dir(x_tbd, w_ih, w_hh, b_ih, b_hh, *, reverse, mimic_bf16):
    H = w_hh.shape[1]
    B = x_tbd.shape[1]
    mm = jnp.bfloat16 if mimic_bf16 else jnp.float32
    wih_t = w_ih.T.astype(mm)
    whh_t = w_hh.T.astype(mm)
    b = (b_ih + b_hh).astype(jnp.float32)
    xs = (x_tbd[::-1] if reverse else x_tbd).astype(mm)

    def step(carry, xt):
        h, c = carry
        gates = (jnp.dot(xt, wih_t, preferred_element_type=jnp.float32)
                 + jnp.dot(h.astype(mm), whh_t, preferred_element_type=jnp.float32)
                 + b)
        i = jax.nn.sigmoid(gates[:, :H])
        f = jax.nn.sigmoid(gates[:, H:2 * H])
        g = jnp.tanh(gates[:, 2 * H:3 * H])
        o = jax.nn.sigmoid(gates[:, 3 * H:])
        c = f * c + i * g
        h = o * jnp.tanh(c)
        return (h, c), h

    init = (jnp.zeros((B, H), jnp.float32), jnp.zeros((B, H), jnp.float32))
    (h_fin, _), out = jax.lax.scan(step, init, xs)
    if reverse:
        out = out[::-1]
    return out, h_fin


def _ref_encoder(x, params, num_layers, bidirectional, *, mimic_bf16):
    num_dir = 2 if bidirectional else 1
    layer_in = jnp.transpose(x, (1, 0, 2))
    h_last = []
    for layer in range(num_layers):
        outs, h_last = [], []
        for d in range(num_dir):
            out, h = _ref_layer_dir(layer_in, *params[(layer, d)],
                                    reverse=(d == 1), mimic_bf16=mimic_bf16)
            outs.append(out)
            h_last.append(h)
        layer_in = jnp.concatenate(outs, axis=-1) if num_dir == 2 else outs[0]
    return jnp.concatenate(h_last, axis=1) if num_dir == 2 else h_last[0]


# --------------------------------------- main ----------------------------------------
if __name__ == "__main__":
    B, T = 2, 8
    input_dim = 16
    hidden_size = 32
    num_layers = 2
    bidirectional = True
    num_directions = 2 if bidirectional else 1

    key = jax.random.PRNGKey(0)
    key, xk = jax.random.split(key)
    x = jax.random.normal(xk, (B, T, input_dim), dtype=jnp.float32)

    # Deterministic PyTorch-style uniform(-1/sqrt(H), 1/sqrt(H)) parameters.
    bound = 1.0 / (hidden_size ** 0.5)
    params = {}
    for layer in range(num_layers):
        in_dim = input_dim if layer == 0 else hidden_size * num_directions
        for d in range(num_directions):
            key, k1, k2, k3, k4 = jax.random.split(key, 5)
            params[(layer, d)] = (
                jax.random.uniform(k1, (4 * hidden_size, in_dim), jnp.float32, -bound, bound),
                jax.random.uniform(k2, (4 * hidden_size, hidden_size), jnp.float32, -bound, bound),
                jax.random.uniform(k3, (4 * hidden_size,), jnp.float32, -bound, bound),
                jax.random.uniform(k4, (4 * hidden_size,), jnp.float32, -bound, bound),
            )

    hn = jax.block_until_ready(
        lstm_encoder_forward(x, params, hidden_size, num_layers, bidirectional))
    assert hn.shape == (B, hidden_size * num_directions), hn.shape

    # Tight check vs a reference mimicking the kernel's bf16-MXU / f32-accumulate precision.
    hn_ref = jax.block_until_ready(
        _ref_encoder(x, params, num_layers, bidirectional, mimic_bf16=True))
    err = float(jnp.max(jnp.abs(hn.astype(jnp.float32) - hn_ref.astype(jnp.float32))))
    assert err < 2e-3, err

    # Loose sanity check vs full-f32 (PyTorch-semantics) reference; difference is only the
    # documented bf16 MXU-operand rounding.
    hn_f32 = jax.block_until_ready(
        _ref_encoder(x, params, num_layers, bidirectional, mimic_bf16=False))
    err_f32 = float(jnp.max(jnp.abs(hn.astype(jnp.float32) - hn_f32)))
    assert err_f32 < 1e-1, err_f32

    print("KERNEL_OK")
</pallas_src>

<mosaic_0001>
module attributes {stable_mosaic.version = 11 : i64} {
  func.func @_lstm_layer_kernel(%arg0: memref<64x16xbf16, #tpu.memory_space<vmem>>, %arg1: memref<16x256xbf16, #tpu.memory_space<vmem>>, %arg2: memref<2x128x128xbf16, #tpu.memory_space<vmem>>, %arg3: memref<2x1x128xf32, #tpu.memory_space<vmem>>, %arg4: memref<64x256xf32, #tpu.memory_space<vmem>>, %arg5: memref<2x8x128xf32, #tpu.memory_space<vmem>>, %arg6: memref<64x256xf32, #tpu.memory_space<vmem>>) attributes {dimension_semantics = [], scalar_prefetch = 0 : i64, scratch_operands = 1 : i64, tpu.core_type = #tpu.core_type<tc>} {
    %c0 = arith.constant 0 : index
    %c0_0 = arith.constant 0 : index
    %0 = vector.load %arg0[%c0, %c0_0] : memref<64x16xbf16, #tpu.memory_space<vmem>>, vector<64x16xbf16>
    %c0_1 = arith.constant 0 : index
    %c0_2 = arith.constant 0 : index
    %1 = vector.load %arg1[%c0_1, %c0_2] : memref<16x256xbf16, #tpu.memory_space<vmem>>, vector<16x256xbf16>
    %cst = arith.constant dense<0.000000e+00> : vector<64x256xf32>
    %2 = tpu.matmul %0, %1, %cst {dimension_numbers = #tpu.dot_dimension_numbers<[1], [0], [0], [1], [0, 0, 1, 1], [], []>} : vector<64x16xbf16>, vector<16x256xbf16>, vector<64x256xf32> -> vector<64x256xf32>
    %c0_3 = arith.constant 0 : index
    %c0_4 = arith.constant 0 : index
    %3 = vector.load %arg6[%c0_3, %c0_4] : memref<64x256xf32, #tpu.memory_space<vmem>>, vector<64x256xf32>
    tpu.vector_store %arg6[%c0_3, %c0_4], %2 {strides = array<i32>} : memref<64x256xf32, #tpu.memory_space<vmem>>, vector<64x256xf32>,
    %c0_5 = arith.constant 0 : index
    %c0_6 = arith.constant 0 : index
    %c0_7 = arith.constant 0 : index
    %4 = vector.load %arg2[%c0_5, %c0_6, %c0_7] : memref<2x128x128xbf16, #tpu.memory_space<vmem>>, vector<1x128x128xbf16>
    %5 = vector.shape_cast %4 : vector<1x128x128xbf16> to vector<128x128xbf16>
    %c1 = arith.constant 1 : index
    %c0_8 = arith.constant 0 : index
    %c0_9 = arith.constant 0 : index
    %6 = vector.load %arg2[%c1, %c0_8, %c0_9] : memref<2x128x128xbf16, #tpu.memory_space<vmem>>, vector<1x128x128xbf16>
    %7 = vector.shape_cast %6 : vector<1x128x128xbf16> to vector<128x128xbf16>
    %c0_10 = arith.constant 0 : index
    %c0_11 = arith.constant 0 : index
    %c0_12 = arith.constant 0 : index
    %8 = vector.load %arg3[%c0_10, %c0_11, %c0_12] : memref<2x1x128xf32, #tpu.memory_space<vmem>>, vector<1x1x128xf32>
    %9 = vector.shape_cast %8 : vector<1x1x128xf32> to vector<1x128xf32>
    %10 = vector.shape_cast %9 : vector<1x128xf32> to vector<1x128xf32>
    %11 = vector.broadcast %10 : vector<1x128xf32> to vector<8x128xf32>
    %c1_13 = arith.constant 1 : index
    %c0_14 = arith.constant 0 : index
    %c0_15 = arith.constant 0 : index
    %12 = vector.load %arg3[%c1_13, %c0_14, %c0_15] : memref<2x1x128xf32, #tpu.memory_space<vmem>>, vector<1x1x128xf32>
    %13 = vector.shape_cast %12 : vector<1x1x128xf32> to vector<1x128xf32>
    %14 = vector.shape_cast %13 : vector<1x128xf32> to vector<1x128xf32>
    %15 = vector.broadcast %14 : vector<1x128xf32> to vector<8x128xf32>
    %16 = tpu.iota {dimensions = array<i32: 1>} : vector<8x128xi32>
    %c64_i32 = arith.constant 64 : i32
    %17 = vector.broadcast %c64_i32 : i32 to vector<8x128xi32>
    %18 = arith.cmpi sge, %16, %17 : vector<8x128xi32>
    %c96_i32 = arith.constant 96 : i32
    %19 = vector.broadcast %c96_i32 : i32 to vector<8x128xi32>
    %20 = arith.cmpi slt, %16, %19 : vector<8x128xi32>
    %21 = arith.andi %18, %20 : vector<8x128xi1>
    %cst_16 = arith.constant 1.000000e+00 : f32
    %cst_17 = arith.constant 5.000000e-01 : f32
    %22 = vector.broadcast %cst_16 : f32 to vector<8x128xf32>
    %23 = vector.broadcast %cst_17 : f32 to vector<8x128xf32>
    %24 = arith.select %21, %22, %23 : vector<8x128xi1>, vector<8x128xf32>
    %cst_18 = arith.constant 0.000000e+00 : f32
    %cst_19 = arith.constant 5.000000e-01 : f32
    %25 = vector.broadcast %cst_18 : f32 to vector<8x128xf32>
    %26 = vector.broadcast %cst_19 : f32 to vector<8x128xf32>
    %27 = arith.select %21, %25, %26 : vector<8x128xi1>, vector<8x128xf32>
    %cst_20 = arith.constant 0.000000e+00 : f32
    %28 = vector.broadcast %cst_20 : f32 to vector<8x128xf32>
    %c0_i32 = arith.constant 0 : i32
    %c8_i32 = arith.constant 8 : i32
    %29 = arith.muli %c0_i32, %c8_i32 : i32
    %30 = tpu.assume_multiple %29, 8 : i32
    %31 = arith.index_cast %30 : i32 to index
    %c0_21 = arith.constant 0 : index
    %32 = vector.load %arg6[%31, %c0_21] : memref<64x256xf32, #tpu.memory_space<vmem>>, vector<8x128xf32>
    %33 = arith.truncf %28 : vector<8x128xf32> to vector<8x128xbf16>
    %cst_22 = arith.constant dense<0.000000e+00> : vector<8x128xf32>
    %34 = tpu.matmul %33, %5, %cst_22 {dimension_numbers = #tpu.dot_dimension_numbers<[1], [0], [0], [1], [0, 0, 1, 1], [], []>} : vector<8x128xbf16>, vector<128x128xbf16>, vector<8x128xf32> -> vector<8x128xf32>
    %35 = arith.addf %32, %34 : vector<8x128xf32>
    %36 = arith.addf %35, %11 : vector<8x128xf32>
    %37 = arith.mulf %36, %24 : vector<8x128xf32>
    %38 = math.tanh %37 : vector<8x128xf32>
    %39 = arith.mulf %38, %24 : vector<8x128xf32>
    %40 = arith.addf %39, %27 : vector<8x128xf32>
    %c96_i32_23 = arith.constant 96 : i32
    %41 = tpu.dynamic_rotate %40 by %c96_i32_23 dim 1 : vector<8x128xf32>, i32 -> vector<8x128xf32>
    %c64_i32_24 = arith.constant 64 : i32
    %42 = tpu.dynamic_rotate %40 by %c64_i32_24 dim 1 : vector<8x128xf32>, i32 -> vector<8x128xf32>
    %c32_i32 = arith.constant 32 : i32
    %43 = tpu.dynamic_rotate %40 by %c32_i32 dim 1 : vector<8x128xf32>, i32 -> vector<8x128xf32>
    %44 = arith.mulf %41, %28 : vector<8x128xf32>
    %45 = arith.mulf %40, %42 : vector<8x128xf32>
    %46 = arith.addf %44, %45 : vector<8x128xf32>
    %47 = math.tanh %46 : vector<8x128xf32>
    %48 = arith.mulf %43, %47 : vector<8x128xf32>
    %49 = arith.index_cast %30 : i32 to index
    %c0_25 = arith.constant 0 : index
    %50 = vector.load %arg4[%49, %c0_25] : memref<64x256xf32, #tpu.memory_space<vmem>>, vector<8x128xf32>
    tpu.vector_store %arg4[%49, %c0_25], %48 {strides = array<i32>} : memref<64x256xf32, #tpu.memory_space<vmem>>, vector<8x128xf32>,
    %c7_i32 = arith.constant 7 : i32
    %51 = arith.subi %c7_i32, %c0_i32 : i32
    %c8_i32_26 = arith.constant 8 : i32
    %52 = arith.muli %51, %c8_i32_26 : i32
    %53 = tpu.assume_multiple %52, 8 : i32
    %54 = arith.index_cast %53 : i32 to index
    %c128 = arith.constant 128 : index
    %55 = vector.load %arg6[%54, %c128] : memref<64x256xf32, #tpu.memory_space<vmem>>, vector<8x128xf32>
    %56 = arith.truncf %28 : vector<8x128xf32> to vector<8x128xbf16>
    %cst_27 = arith.constant dense<0.000000e+00> : vector<8x128xf32>
    %57 = tpu.matmul %56, %7, %cst_27 {dimension_numbers = #tpu.dot_dimension_numbers<[1], [0], [0], [1], [0, 0, 1, 1], [], []>} : vector<8x128xbf16>, vector<128x128xbf16>, vector<8x128xf32> -> vector<8x128xf32>
    %58 = arith.addf %55, %57 : vector<8x128xf32>
    %59 = arith.addf %58, %15 : vector<8x128xf32>
    %60 = arith.mulf %59, %24 : vector<8x128xf32>
    %61 = math.tanh %60 : vector<8x128xf32>
    %62 = arith.mulf %61, %24 : vector<8x128xf32>
    %63 = arith.addf %62, %27 : vector<8x128xf32>
    %c96_i32_28 = arith.constant 96 : i32
    %64 = tpu.dynamic_rotate %63 by %c96_i32_28 dim 1 : vector<8x128xf32>, i32 -> vector<8x128xf32>
    %c64_i32_29 = arith.constant 64 : i32
    %65 = tpu.dynamic_rotate %63 by %c64_i32_29 dim 1 : vector<8x128xf32>, i32 -> vector<8x128xf32>
    %c32_i32_30 = arith.constant 32 : i32
    %66 = tpu.dynamic_rotate %63 by %c32_i32_30 dim 1 : vector<8x128xf32>, i32 -> vector<8x128xf32>
    %67 = arith.mulf %64, %28 : vector<8x128xf32>
    %68 = arith.mulf %63, %65 : vector<8x128xf32>
    %69 = arith.addf %67, %68 : vector<8x128xf32>
    %70 = math.tanh %69 : vector<8x128xf32>
    %71 = arith.mulf %66, %70 : vector<8x128xf32>
    %72 = arith.index_cast %53 : i32 to index
    %c128_31 = arith.constant 128 : index
    %73 = vector.load %arg4[%72, %c128_31] : memref<64x256xf32, #tpu.memory_space<vmem>>, vector<8x128xf32>
    tpu.vector_store %arg4[%72, %c128_31], %71 {strides = array<i32>} : memref<64x256xf32, #tpu.memory_space<vmem>>, vector<8x128xf32>,
    %c1_i32 = arith.constant 1 : i32
    %c8_i32_32 = arith.constant 8 : i32
    %74 = arith.muli %c1_i32, %c8_i32_32 : i32
    %75 = tpu.assume_multiple %74, 8 : i32
    %76 = arith.index_cast %75 : i32 to index
    %c0_33 = arith.constant 0 : index
    %77 = vector.load %arg6[%76, %c0_33] : memref<64x256xf32, #tpu.memory_space<vmem>>, vector<8x128xf32>
    %78 = arith.truncf %48 : vector<8x128xf32> to vector<8x128xbf16>
    %cst_34 = arith.constant dense<0.000000e+00> : vector<8x128xf32>
    %79 = tpu.matmul %78, %5, %cst_34 {dimension_numbers = #tpu.dot_dimension_numbers<[1], [0], [0], [1], [0, 0, 1, 1], [], []>} : vector<8x128xbf16>, vector<128x128xbf16>, vector<8x128xf32> -> vector<8x128xf32>
    %80 = arith.addf %77, %79 : vector<8x128xf32>
    %81 = arith.addf %80, %11 : vector<8x128xf32>
    %82 = arith.mulf %81, %24 : vector<8x128xf32>
    %83 = math.tanh %82 : vector<8x128xf32>
    %84 = arith.mulf %83, %24 : vector<8x128xf32>
    %85 = arith.addf %84, %27 : vector<8x128xf32>
    %c96_i32_35 = arith.constant 96 : i32
    %86 = tpu.dynamic_rotate %85 by %c96_i32_35 dim 1 : vector<8x128xf32>, i32 -> vector<8x128xf32>
    %c64_i32_36 = arith.constant 64 : i32
    %87 = tpu.dynamic_rotate %85 by %c64_i32_36 dim 1 : vector<8x128xf32>, i32 -> vector<8x128xf32>
    %c32_i32_37 = arith.constant 32 : i32
    %88 = tpu.dynamic_rotate %85 by %c32_i32_37 dim 1 : vector<8x128xf32>, i32 -> vector<8x128xf32>
    %89 = arith.mulf %86, %46 : vector<8x128xf32>
    %90 = arith.mulf %85, %87 : vector<8x128xf32>
    %91 = arith.addf %89, %90 : vector<8x128xf32>
    %92 = math.tanh %91 : vector<8x128xf32>
    %93 = arith.mulf %88, %92 : vector<8x128xf32>
    %94 = arith.index_cast %75 : i32 to index
    %c0_38 = arith.constant 0 : index
    %95 = vector.load %arg4[%94, %c0_38] : memref<64x256xf32, #tpu.memory_space<vmem>>, vector<8x128xf32>
    tpu.vector_store %arg4[%94, %c0_38], %93 {strides = array<i32>} : memref<64x256xf32, #tpu.memory_space<vmem>>, vector<8x128xf32>,
    %c7_i32_39 = arith.constant 7 : i32
    %96 = arith.subi %c7_i32_39, %c1_i32 : i32
    %c8_i32_40 = arith.constant 8 : i32
    %97 = arith.muli %96, %c8_i32_40 : i32
    %98 = tpu.assume_multiple %97, 8 : i32
    %99 = arith.index_cast %98 : i32 to index
    %c128_41 = arith.constant 128 : index
    %100 = vector.load %arg6[%99, %c128_41] : memref<64x256xf32, #tpu.memory_space<vmem>>, vector<8x128xf32>
    %101 = arith.truncf %71 : vector<8x128xf32> to vector<8x128xbf16>
    %cst_42 = arith.constant dense<0.000000e+00> : vector<8x128xf32>
    %102 = tpu.matmul %101, %7, %cst_42 {dimension_numbers = #tpu.dot_dimension_numbers<[1], [0], [0], [1], [0, 0, 1, 1], [], []>} : vector<8x128xbf16>, vector<128x128xbf16>, vector<8x128xf32> -> vector<8x128xf32>
    %103 = arith.addf %100, %102 : vector<8x128xf32>
    %104 = arith.addf %103, %15 : vector<8x128xf32>
    %105 = arith.mulf %104, %24 : vector<8x128xf32>
    %106 = math.tanh %105 : vector<8x128xf32>
    %107 = arith.mulf %106, %24 : vector<8x128xf32>
    %108 = arith.addf %107, %27 : vector<8x128xf32>
    %c96_i32_43 = arith.constant 96 : i32
    %109 = tpu.dynamic_rotate %108 by %c96_i32_43 dim 1 : vector<8x128xf32>, i32 -> vector<8x128xf32>
    %c64_i32_44 = arith.constant 64 : i32
    %110 = tpu.dynamic_rotate %108 by %c64_i32_44 dim 1 : vector<8x128xf32>, i32 -> vector<8x128xf32>
    %c32_i32_45 = arith.constant 32 : i32
    %111 = tpu.dynamic_rotate %108 by %c32_i32_45 dim 1 : vector<8x128xf32>, i32 -> vector<8x128xf32>
    %112 = arith.mulf %109, %69 : vector<8x128xf32>
    %113 = arith.mulf %108, %110 : vector<8x128xf32>
    %114 = arith.addf %112, %113 : vector<8x128xf32>
    %115 = math.tanh %114 : vector<8x128xf32>
    %116 = arith.mulf %111, %115 : vector<8x128xf32>
    %117 = arith.index_cast %98 : i32 to index
    %c128_46 = arith.constant 128 : index
    %118 = vector.load %arg4[%117, %c128_46] : memref<64x256xf32, #tpu.memory_space<vmem>>, vector<8x128xf32>
    tpu.vector_store %arg4[%117, %c128_46], %116 {strides = array<i32>} : memref<64x256xf32, #tpu.memory_space<vmem>>, vector<8x128xf32>,
    %c2_i32 = arith.constant 2 : i32
    %c8_i32_47 = arith.constant 8 : i32
    %119 = arith.muli %c2_i32, %c8_i32_47 : i32
    %120 = tpu.assume_multiple %119, 8 : i32
    %121 = arith.index_cast %120 : i32 to index
    %c0_48 = arith.constant 0 : index
    %122 = vector.load %arg6[%121, %c0_48] : memref<64x256xf32, #tpu.memory_space<vmem>>, vector<8x128xf32>
    %123 = arith.truncf %93 : vector<8x128xf32> to vector<8x128xbf16>
    %cst_49 = arith.constant dense<0.000000e+00> : vector<8x128xf32>
    %124 = tpu.matmul %123, %5, %cst_49 {dimension_numbers = #tpu.dot_dimension_numbers<[1], [0], [0], [1], [0, 0, 1, 1], [], []>} : vector<8x128xbf16>, vector<128x128xbf16>, vector<8x128xf32> -> vector<8x128xf32>
    %125 = arith.addf %122, %124 : vector<8x128xf32>
    %126 = arith.addf %125, %11 : vector<8x128xf32>
    %127 = arith.mulf %126, %24 : vector<8x128xf32>
    %128 = math.tanh %127 : vector<8x128xf32>
    %129 = arith.mulf %128, %24 : vector<8x128xf32>
    %130 = arith.addf %129, %27 : vector<8x128xf32>
    %c96_i32_50 = arith.constant 96 : i32
    %131 = tpu.dynamic_rotate %130 by %c96_i32_50 dim 1 : vector<8x128xf32>, i32 -> vector<8x128xf32>
    %c64_i32_51 = arith.constant 64 : i32
    %132 = tpu.dynamic_rotate %130 by %c64_i32_51 dim 1 : vector<8x128xf32>, i32 -> vector<8x128xf32>
    %c32_i32_52 = arith.constant 32 : i32
    %133 = tpu.dynamic_rotate %130 by %c32_i32_52 dim 1 : vector<8x128xf32>, i32 -> vector<8x128xf32>
    %134 = arith.mulf %131, %91 : vector<8x128xf32>
    %135 = arith.mulf %130, %132 : vector<8x128xf32>
    %136 = arith.addf %134, %135 : vector<8x128xf32>
    %137 = math.tanh %136 : vector<8x128xf32>
    %138 = arith.mulf %133, %137 : vector<8x128xf32>
    %139 = arith.index_cast %120 : i32 to index
    %c0_53 = arith.constant 0 : index
    %140 = vector.load %arg4[%139, %c0_53] : memref<64x256xf32, #tpu.memory_space<vmem>>, vector<8x128xf32>
    tpu.vector_store %arg4[%139, %c0_53], %138 {strides = array<i32>} : memref<64x256xf32, #tpu.memory_space<vmem>>, vector<8x128xf32>,
    %c7_i32_54 = arith.constant 7 : i32
    %141 = arith.subi %c7_i32_54, %c2_i32 : i32
    %c8_i32_55 = arith.constant 8 : i32
    %142 = arith.muli %141, %c8_i32_55 : i32
    %143 = tpu.assume_multiple %142, 8 : i32
    %144 = arith.index_cast %143 : i32 to index
    %c128_56 = arith.constant 128 : index
    %145 = vector.load %arg6[%144, %c128_56] : memref<64x256xf32, #tpu.memory_space<vmem>>, vector<8x128xf32>
    %146 = arith.truncf %116 : vector<8x128xf32> to vector<8x128xbf16>
    %cst_57 = arith.constant dense<0.000000e+00> : vector<8x128xf32>
    %147 = tpu.matmul %146, %7, %cst_57 {dimension_numbers = #tpu.dot_dimension_numbers<[1], [0], [0], [1], [0, 0, 1, 1], [], []>} : vector<8x128xbf16>, vector<128x128xbf16>, vector<8x128xf32> -> vector<8x128xf32>
    %148 = arith.addf %145, %147 : vector<8x128xf32>
    %149 = arith.addf %148, %15 : vector<8x128xf32>
    %150 = arith.mulf %149, %24 : vector<8x128xf32>
    %151 = math.tanh %150 : vector<8x128xf32>
    %152 = arith.mulf %151, %24 : vector<8x128xf32>
    %153 = arith.addf %152, %27 : vector<8x128xf32>
    %c96_i32_58 = arith.constant 96 : i32
    %154 = tpu.dynamic_rotate %153 by %c96_i32_58 dim 1 : vector<8x128xf32>, i32 -> vector<8x128xf32>
    %c64_i32_59 = arith.constant 64 : i32
    %155 = tpu.dynamic_rotate %153 by %c64_i32_59 dim 1 : vector<8x128xf32>, i32 -> vector<8x128xf32>
    %c32_i32_60 = arith.constant 32 : i32
    %156 = tpu.dynamic_rotate %153 by %c32_i32_60 dim 1 : vector<8x128xf32>, i32 -> vector<8x128xf32>
    %157 = arith.mulf %154, %114 : vector<8x128xf32>
    %158 = arith.mulf %153, %155 : vector<8x128xf32>
    %159 = arith.addf %157, %158 : vector<8x128xf32>
    %160 = math.tanh %159 : vector<8x128xf32>
    %161 = arith.mulf %156, %160 : vector<8x128xf32>
    %162 = arith.index_cast %143 : i32 to index
    %c128_61 = arith.constant 128 : index
    %163 = vector.load %arg4[%162, %c128_61] : memref<64x256xf32, #tpu.memory_space<vmem>>, vector<8x128xf32>
    tpu.vector_store %arg4[%162, %c128_61], %161 {strides = array<i32>} : memref<64x256xf32, #tpu.memory_space<vmem>>, vector<8x128xf32>,
    %c3_i32 = arith.constant 3 : i32
    %c8_i32_62 = arith.constant 8 : i32
    %164 = arith.muli %c3_i32, %c8_i32_62 : i32
    %165 = tpu.assume_multiple %164, 8 : i32
    %166 = arith.index_cast %165 : i32 to index
    %c0_63 = arith.constant 0 : index
    %167 = vector.load %arg6[%166, %c0_63] : memref<64x256xf32, #tpu.memory_space<vmem>>, vector<8x128xf32>
    %168 = arith.truncf %138 : vector<8x128xf32> to vector<8x128xbf16>
    %cst_64 = arith.constant dense<0.000000e+00> : vector<8x128xf32>
    %169 = tpu.matmul %168, %5, %cst_64 {dimension_numbers = #tpu.dot_dimension_numbers<[1], [0], [0], [1], [0, 0, 1, 1], [], []>} : vector<8x128xbf16>, vector<128x128xbf16>, vector<8x128xf32> -> vector<8x128xf32>
    %170 = arith.addf %167, %169 : vector<8x128xf32>
    %171 = arith.addf %170, %11 : vector<8x128xf32>
    %172 = arith.mulf %171, %24 : vector<8x128xf32>
    %173 = math.tanh %172 : vector<8x128xf32>
    %174 = arith.mulf %173, %24 : vector<8x128xf32>
    %175 = arith.addf %174, %27 : vector<8x128xf32>
    %c96_i32_65 = arith.constant 96 : i32
    %176 = tpu.dynamic_rotate %175 by %c96_i32_65 dim 1 : vector<8x128xf32>, i32 -> vector<8x128xf32>
    %c64_i32_66 = arith.constant 64 : i32
    %177 = tpu.dynamic_rotate %175 by %c64_i32_66 dim 1 : vector<8x128xf32>, i32 -> vector<8x128xf32>
    %c32_i32_67 = arith.constant 32 : i32
    %178 = tpu.dynamic_rotate %175 by %c32_i32_67 dim 1 : vector<8x128xf32>, i32 -> vector<8x128xf32>
    %179 = arith.mulf %176, %136 : vector<8x128xf32>
    %180 = arith.mulf %175, %177 : vector<8x128xf32>
    %181 = arith.addf %179, %180 : vector<8x128xf32>
    %182 = math.tanh %181 : vector<8x128xf32>
    %183 = arith.mulf %178, %182 : vector<8x128xf32>
    %184 = arith.index_cast %165 : i32 to index
    %c0_68 = arith.constant 0 : index
    %185 = vector.load %arg4[%184, %c0_68] : memref<64x256xf32, #tpu.memory_space<vmem>>, vector<8x128xf32>
    tpu.vector_store %arg4[%184, %c0_68], %183 {strides = array<i32>} : memref<64x256xf32, #tpu.memory_space<vmem>>, vector<8x128xf32>,
    %c7_i32_69 = arith.constant 7 : i32
    %186 = arith.subi %c7_i32_69, %c3_i32 : i32
    %c8_i32_70 = arith.constant 8 : i32
    %187 = arith.muli %186, %c8_i32_70 : i32
    %188 = tpu.assume_multiple %187, 8 : i32
    %189 = arith.index_cast %188 : i32 to index
    %c128_71 = arith.constant 128 : index
    %190 = vector.load %arg6[%189, %c128_71] : memref<64x256xf32, #tpu.memory_space<vmem>>, vector<8x128xf32>
    %191 = arith.truncf %161 : vector<8x128xf32> to vector<8x128xbf16>
    %cst_72 = arith.constant dense<0.000000e+00> : vector<8x128xf32>
    %192 = tpu.matmul %191, %7, %cst_72 {dimension_numbers = #tpu.dot_dimension_numbers<[1], [0], [0], [1], [0, 0, 1, 1], [], []>} : vector<8x128xbf16>, vector<128x128xbf16>, vector<8x128xf32> -> vector<8x128xf32>
    %193 = arith.addf %190, %192 : vector<8x128xf32>
    %194 = arith.addf %193, %15 : vector<8x128xf32>
    %195 = arith.mulf %194, %24 : vector<8x128xf32>
    %196 = math.tanh %195 : vector<8x128xf32>
    %197 = arith.mulf %196, %24 : vector<8x128xf32>
    %198 = arith.addf %197, %27 : vector<8x128xf32>
    %c96_i32_73 = arith.constant 96 : i32
    %199 = tpu.dynamic_rotate %198 by %c96_i32_73 dim 1 : vector<8x128xf32>, i32 -> vector<8x128xf32>
    %c64_i32_74 = arith.constant 64 : i32
    %200 = tpu.dynamic_rotate %198 by %c64_i32_74 dim 1 : vector<8x128xf32>, i32 -> vector<8x128xf32>
    %c32_i32_75 = arith.constant 32 : i32
    %201 = tpu.dynamic_rotate %198 by %c32_i32_75 dim 1 : vector<8x128xf32>, i32 -> vector<8x128xf32>
    %202 = arith.mulf %199, %159 : vector<8x128xf32>
    %203 = arith.mulf %198, %200 : vector<8x128xf32>
    %204 = arith.addf %202, %203 : vector<8x128xf32>
    %205 = math.tanh %204 : vector<8x128xf32>
    %206 = arith.mulf %201, %205 : vector<8x128xf32>
    %207 = arith.index_cast %188 : i32 to index
    %c128_76 = arith.constant 128 : index
    %208 = vector.load %arg4[%207, %c128_76] : memref<64x256xf32, #tpu.memory_space<vmem>>, vector<8x128xf32>
    tpu.vector_store %arg4[%207, %c128_76], %206 {strides = array<i32>} : memref<64x256xf32, #tpu.memory_space<vmem>>, vector<8x128xf32>,
    %c4_i32 = arith.constant 4 : i32
    %c8_i32_77 = arith.constant 8 : i32
    %209 = arith.muli %c4_i32, %c8_i32_77 : i32
    %210 = tpu.assume_multiple %209, 8 : i32
    %211 = arith.index_cast %210 : i32 to index
    %c0_78 = arith.constant 0 : index
    %212 = vector.load %arg6[%211, %c0_78] : memref<64x256xf32, #tpu.memory_space<vmem>>, vector<8x128xf32>
    %213 = arith.truncf %183 : vector<8x128xf32> to vector<8x128xbf16>
    %cst_79 = arith.constant dense<0.000000e+00> : vector<8x128xf32>
    %214 = tpu.matmul %213, %5, %cst_79 {dimension_numbers = #tpu.dot_dimension_numbers<[1], [0], [0], [1], [0, 0, 1, 1], [], []>} : vector<8x128xbf16>, vector<128x128xbf16>, vector<8x128xf32> -> vector<8x128xf32>
    %215 = arith.addf %212, %214 : vector<8x128xf32>
    %216 = arith.addf %215, %11 : vector<8x128xf32>
    %217 = arith.mulf %216, %24 : vector<8x128xf32>
    %218 = math.tanh %217 : vector<8x128xf32>
    %219 = arith.mulf %218, %24 : vector<8x128xf32>
    %220 = arith.addf %219, %27 : vector<8x128xf32>
    %c96_i32_80 = arith.constant 96 : i32
    %221 = tpu.dynamic_rotate %220 by %c96_i32_80 dim 1 : vector<8x128xf32>, i32 -> vector<8x128xf32>
    %c64_i32_81 = arith.constant 64 : i32
    %222 = tpu.dynamic_rotate %220 by %c64_i32_81 dim 1 : vector<8x128xf32>, i32 -> vector<8x128xf32>
    %c32_i32_82 = arith.constant 32 : i32
    %223 = tpu.dynamic_rotate %220 by %c32_i32_82 dim 1 : vector<8x128xf32>, i32 -> vector<8x128xf32>
    %224 = arith.mulf %221, %181 : vector<8x128xf32>
    %225 = arith.mulf %220, %222 : vector<8x128xf32>
    %226 = arith.addf %224, %225 : vector<8x128xf32>
    %227 = math.tanh %226 : vector<8x128xf32>
    %228 = arith.mulf %223, %227 : vector<8x128xf32>
    %229 = arith.index_cast %210 : i32 to index
    %c0_83 = arith.constant 0 : index
    %230 = vector.load %arg4[%229, %c0_83] : memref<64x256xf32, #tpu.memory_space<vmem>>, vector<8x128xf32>
    tpu.vector_store %arg4[%229, %c0_83], %228 {strides = array<i32>} : memref<64x256xf32, #tpu.memory_space<vmem>>, vector<8x128xf32>,
    %c7_i32_84 = arith.constant 7 : i32
    %231 = arith.subi %c7_i32_84, %c4_i32 : i32
    %c8_i32_85 = arith.constant 8 : i32
    %232 = arith.muli %231, %c8_i32_85 : i32
    %233 = tpu.assume_multiple %232, 8 : i32
    %234 = arith.index_cast %233 : i32 to index
    %c128_86 = arith.constant 128 : index
    %235 = vector.load %arg6[%234, %c128_86] : memref<64x256xf32, #tpu.memory_space<vmem>>, vector<8x128xf32>
    %236 = arith.truncf %206 : vector<8x128xf32> to vector<8x128xbf16>
    %cst_87 = arith.constant dense<0.000000e+00> : vector<8x128xf32>
    %237 = tpu.matmul %236, %7, %cst_87 {dimension_numbers = #tpu.dot_dimension_numbers<[1], [0], [0], [1], [0, 0, 1, 1], [], []>} : vector<8x128xbf16>, vector<128x128xbf16>, vector<8x128xf32> -> vector<8x128xf32>
    %238 = arith.addf %235, %237 : vector<8x128xf32>
    %239 = arith.addf %238, %15 : vector<8x128xf32>
    %240 = arith.mulf %239, %24 : vector<8x128xf32>
    %241 = math.tanh %240 : vector<8x128xf32>
    %242 = arith.mulf %241, %24 : vector<8x128xf32>
    %243 = arith.addf %242, %27 : vector<8x128xf32>
    %c96_i32_88 = arith.constant 96 : i32
    %244 = tpu.dynamic_rotate %243 by %c96_i32_88 dim 1 : vector<8x128xf32>, i32 -> vector<8x128xf32>
    %c64_i32_89 = arith.constant 64 : i32
    %245 = tpu.dynamic_rotate %243 by %c64_i32_89 dim 1 : vector<8x128xf32>, i32 -> vector<8x128xf32>
    %c32_i32_90 = arith.constant 32 : i32
    %246 = tpu.dynamic_rotate %243 by %c32_i32_90 dim 1 : vector<8x128xf32>, i32 -> vector<8x128xf32>
    %247 = arith.mulf %244, %204 : vector<8x128xf32>
    %248 = arith.mulf %243, %245 : vector<8x128xf32>
    %249 = arith.addf %247, %248 : vector<8x128xf32>
    %250 = math.tanh %249 : vector<8x128xf32>
    %251 = arith.mulf %246, %250 : vector<8x128xf32>
    %252 = arith.index_cast %233 : i32 to index
    %c128_91 = arith.constant 128 : index
    %253 = vector.load %arg4[%252, %c128_91] : memref<64x256xf32, #tpu.memory_space<vmem>>, vector<8x128xf32>
    tpu.vector_store %arg4[%252, %c128_91], %251 {strides = array<i32>} : memref<64x256xf32, #tpu.memory_space<vmem>>, vector<8x128xf32>,
    %c5_i32 = arith.constant 5 : i32
    %c8_i32_92 = arith.constant 8 : i32
    %254 = arith.muli %c5_i32, %c8_i32_92 : i32
    %255 = tpu.assume_multiple %254, 8 : i32
    %256 = arith.index_cast %255 : i32 to index
    %c0_93 = arith.constant 0 : index
    %257 = vector.load %arg6[%256, %c0_93] : memref<64x256xf32, #tpu.memory_space<vmem>>, vector<8x128xf32>
    %258 = arith.truncf %228 : vector<8x128xf32> to vector<8x128xbf16>
    %cst_94 = arith.constant dense<0.000000e+00> : vector<8x128xf32>
    %259 = tpu.matmul %258, %5, %cst_94 {dimension_numbers = #tpu.dot_dimension_numbers<[1], [0], [0], [1], [0, 0, 1, 1], [], []>} : vector<8x128xbf16>, vector<128x128xbf16>, vector<8x128xf32> -> vector<8x128xf32>
    %260 = arith.addf %257, %259 : vector<8x128xf32>
    %261 = arith.addf %260, %11 : vector<8x128xf32>
    %262 = arith.mulf %261, %24 : vector<8x128xf32>
    %263 = math.tanh %262 : vector<8x128xf32>
    %264 = arith.mulf %263, %24 : vector<8x128xf32>
    %265 = arith.addf %264, %27 : vector<8x128xf32>
    %c96_i32_95 = arith.constant 96 : i32
    %266 = tpu.dynamic_rotate %265 by %c96_i32_95 dim 1 : vector<8x128xf32>, i32 -> vector<8x128xf32>
    %c64_i32_96 = arith.constant 64 : i32
    %267 = tpu.dynamic_rotate %265 by %c64_i32_96 dim 1 : vector<8x128xf32>, i32 -> vector<8x128xf32>
    %c32_i32_97 = arith.constant 32 : i32
    %268 = tpu.dynamic_rotate %265 by %c32_i32_97 dim 1 : vector<8x128xf32>, i32 -> vector<8x128xf32>
    %269 = arith.mulf %266, %226 : vector<8x128xf32>
    %270 = arith.mulf %265, %267 : vector<8x128xf32>
    %271 = arith.addf %269, %270 : vector<8x128xf32>
    %272 = math.tanh %271 : vector<8x128xf32>
    %273 = arith.mulf %268, %272 : vector<8x128xf32>
    %274 = arith.index_cast %255 : i32 to index
    %c0_98 = arith.constant 0 : index
    %275 = vector.load %arg4[%274, %c0_98] : memref<64x256xf32, #tpu.memory_space<vmem>>, vector<8x128xf32>
    tpu.vector_store %arg4[%274, %c0_98], %273 {strides = array<i32>} : memref<64x256xf32, #tpu.memory_space<vmem>>, vector<8x128xf32>,
    %c7_i32_99 = arith.constant 7 : i32
    %276 = arith.subi %c7_i32_99, %c5_i32 : i32
    %c8_i32_100 = arith.constant 8 : i32
    %277 = arith.muli %276, %c8_i32_100 : i32
    %278 = tpu.assume_multiple %277, 8 : i32
    %279 = arith.index_cast %278 : i32 to index
    %c128_101 = arith.constant 128 : index
    %280 = vector.load %arg6[%279, %c128_101] : memref<64x256xf32, #tpu.memory_space<vmem>>, vector<8x128xf32>
    %281 = arith.truncf %251 : vector<8x128xf32> to vector<8x128xbf16>
    %cst_102 = arith.constant dense<0.000000e+00> : vector<8x128xf32>
    %282 = tpu.matmul %281, %7, %cst_102 {dimension_numbers = #tpu.dot_dimension_numbers<[1], [0], [0], [1], [0, 0, 1, 1], [], []>} : vector<8x128xbf16>, vector<128x128xbf16>, vector<8x128xf32> -> vector<8x128xf32>
    %283 = arith.addf %280, %282 : vector<8x128xf32>
    %284 = arith.addf %283, %15 : vector<8x128xf32>
    %285 = arith.mulf %284, %24 : vector<8x128xf32>
    %286 = math.tanh %285 : vector<8x128xf32>
    %287 = arith.mulf %286, %24 : vector<8x128xf32>
    %288 = arith.addf %287, %27 : vector<8x128xf32>
    %c96_i32_103 = arith.constant 96 : i32
    %289 = tpu.dynamic_rotate %288 by %c96_i32_103 dim 1 : vector<8x128xf32>, i32 -> vector<8x128xf32>
    %c64_i32_104 = arith.constant 64 : i32
    %290 = tpu.dynamic_rotate %288 by %c64_i32_104 dim 1 : vector<8x128xf32>, i32 -> vector<8x128xf32>
    %c32_i32_105 = arith.constant 32 : i32
    %291 = tpu.dynamic_rotate %288 by %c32_i32_105 dim 1 : vector<8x128xf32>, i32 -> vector<8x128xf32>
    %292 = arith.mulf %289, %249 : vector<8x128xf32>
    %293 = arith.mulf %288, %290 : vector<8x128xf32>
    %294 = arith.addf %292, %293 : vector<8x128xf32>
    %295 = math.tanh %294 : vector<8x128xf32>
    %296 = arith.mulf %291, %295 : vector<8x128xf32>
    %297 = arith.index_cast %278 : i32 to index
    %c128_106 = arith.constant 128 : index
    %298 = vector.load %arg4[%297, %c128_106] : memref<64x256xf32, #tpu.memory_space<vmem>>, vector<8x128xf32>
    tpu.vector_store %arg4[%297, %c128_106], %296 {strides = array<i32>} : memref<64x256xf32, #tpu.memory_space<vmem>>, vector<8x128xf32>,
    %c6_i32 = arith.constant 6 : i32
    %c8_i32_107 = arith.constant 8 : i32
    %299 = arith.muli %c6_i32, %c8_i32_107 : i32
    %300 = tpu.assume_multiple %299, 8 : i32
    %301 = arith.index_cast %300 : i32 to index
    %c0_108 = arith.constant 0 : index
    %302 = vector.load %arg6[%301, %c0_108] : memref<64x256xf32, #tpu.memory_space<vmem>>, vector<8x128xf32>
    %303 = arith.truncf %273 : vector<8x128xf32> to vector<8x128xbf16>
    %cst_109 = arith.constant dense<0.000000e+00> : vector<8x128xf32>
    %304 = tpu.matmul %303, %5, %cst_109 {dimension_numbers = #tpu.dot_dimension_numbers<[1], [0], [0], [1], [0, 0, 1, 1], [], []>} : vector<8x128xbf16>, vector<128x128xbf16>, vector<8x128xf32> -> vector<8x128xf32>
    %305 = arith.addf %302, %304 : vector<8x128xf32>
    %306 = arith.addf %305, %11 : vector<8x128xf32>
    %307 = arith.mulf %306, %24 : vector<8x128xf32>
    %308 = math.tanh %307 : vector<8x128xf32>
    %309 = arith.mulf %308, %24 : vector<8x128xf32>
    %310 = arith.addf %309, %27 : vector<8x128xf32>
    %c96_i32_110 = arith.constant 96 : i32
    %311 = tpu.dynamic_rotate %310 by %c96_i32_110 dim 1 : vector<8x128xf32>, i32 -> vector<8x128xf32>
    %c64_i32_111 = arith.constant 64 : i32
    %312 = tpu.dynamic_rotate %310 by %c64_i32_111 dim 1 : vector<8x128xf32>, i32 -> vector<8x128xf32>
    %c32_i32_112 = arith.constant 32 : i32
    %313 = tpu.dynamic_rotate %310 by %c32_i32_112 dim 1 : vector<8x128xf32>, i32 -> vector<8x128xf32>
    %314 = arith.mulf %311, %271 : vector<8x128xf32>
    %315 = arith.mulf %310, %312 : vector<8x128xf32>
    %316 = arith.addf %314, %315 : vector<8x128xf32>
    %317 = math.tanh %316 : vector<8x128xf32>
    %318 = arith.mulf %313, %317 : vector<8x128xf32>
    %319 = arith.index_cast %300 : i32 to index
    %c0_113 = arith.constant 0 : index
    %320 = vector.load %arg4[%319, %c0_113] : memref<64x256xf32, #tpu.memory_space<vmem>>, vector<8x128xf32>
    tpu.vector_store %arg4[%319, %c0_113], %318 {strides = array<i32>} : memref<64x256xf32, #tpu.memory_space<vmem>>, vector<8x128xf32>,
    %c7_i32_114 = arith.constant 7 : i32
    %321 = arith.subi %c7_i32_114, %c6_i32 : i32
    %c8_i32_115 = arith.constant 8 : i32
    %322 = arith.muli %321, %c8_i32_115 : i32
    %323 = tpu.assume_multiple %322, 8 : i32
    %324 = arith.index_cast %323 : i32 to index
    %c128_116 = arith.constant 128 : index
    %325 = vector.load %arg6[%324, %c128_116] : memref<64x256xf32, #tpu.memory_space<vmem>>, vector<8x128xf32>
    %326 = arith.truncf %296 : vector<8x128xf32> to vector<8x128xbf16>
    %cst_117 = arith.constant dense<0.000000e+00> : vector<8x128xf32>
    %327 = tpu.matmul %326, %7, %cst_117 {dimension_numbers = #tpu.dot_dimension_numbers<[1], [0], [0], [1], [0, 0, 1, 1], [], []>} : vector<8x128xbf16>, vector<128x128xbf16>, vector<8x128xf32> -> vector<8x128xf32>
    %328 = arith.addf %325, %327 : vector<8x128xf32>
    %329 = arith.addf %328, %15 : vector<8x128xf32>
    %330 = arith.mulf %329, %24 : vector<8x128xf32>
    %331 = math.tanh %330 : vector<8x128xf32>
    %332 = arith.mulf %331, %24 : vector<8x128xf32>
    %333 = arith.addf %332, %27 : vector<8x128xf32>
    %c96_i32_118 = arith.constant 96 : i32
    %334 = tpu.dynamic_rotate %333 by %c96_i32_118 dim 1 : vector<8x128xf32>, i32 -> vector<8x128xf32>
    %c64_i32_119 = arith.constant 64 : i32
    %335 = tpu.dynamic_rotate %333 by %c64_i32_119 dim 1 : vector<8x128xf32>, i32 -> vector<8x128xf32>
    %c32_i32_120 = arith.constant 32 : i32
    %336 = tpu.dynamic_rotate %333 by %c32_i32_120 dim 1 : vector<8x128xf32>, i32 -> vector<8x128xf32>
    %337 = arith.mulf %334, %294 : vector<8x128xf32>
    %338 = arith.mulf %333, %335 : vector<8x128xf32>
    %339 = arith.addf %337, %338 : vector<8x128xf32>
    %340 = math.tanh %339 : vector<8x128xf32>
    %341 = arith.mulf %336, %340 : vector<8x128xf32>
    %342 = arith.index_cast %323 : i32 to index
    %c128_121 = arith.constant 128 : index
    %343 = vector.load %arg4[%342, %c128_121] : memref<64x256xf32, #tpu.memory_space<vmem>>, vector<8x128xf32>
    tpu.vector_store %arg4[%342, %c128_121], %341 {strides = array<i32>} : memref<64x256xf32, #tpu.memory_space<vmem>>, vector<8x128xf32>,
    %c7_i32_122 = arith.constant 7 : i32
    %c8_i32_123 = arith.constant 8 : i32
    %344 = arith.muli %c7_i32_122, %c8_i32_123 : i32
    %345 = tpu.assume_multiple %344, 8 : i32
    %346 = arith.index_cast %345 : i32 to index
    %c0_124 = arith.constant 0 : index
    %347 = vector.load %arg6[%346, %c0_124] : memref<64x256xf32, #tpu.memory_space<vmem>>, vector<8x128xf32>
    %348 = arith.truncf %318 : vector<8x128xf32> to vector<8x128xbf16>
    %cst_125 = arith.constant dense<0.000000e+00> : vector<8x128xf32>
    %349 = tpu.matmul %348, %5, %cst_125 {dimension_numbers = #tpu.dot_dimension_numbers<[1], [0], [0], [1], [0, 0, 1, 1], [], []>} : vector<8x128xbf16>, vector<128x128xbf16>, vector<8x128xf32> -> vector<8x128xf32>
    %350 = arith.addf %347, %349 : vector<8x128xf32>
    %351 = arith.addf %350, %11 : vector<8x128xf32>
    %352 = arith.mulf %351, %24 : vector<8x128xf32>
    %353 = math.tanh %352 : vector<8x128xf32>
    %354 = arith.mulf %353, %24 : vector<8x128xf32>
    %355 = arith.addf %354, %27 : vector<8x128xf32>
    %c96_i32_126 = arith.constant 96 : i32
    %356 = tpu.dynamic_rotate %355 by %c96_i32_126 dim 1 : vector<8x128xf32>, i32 -> vector<8x128xf32>
    %c64_i32_127 = arith.constant 64 : i32
    %357 = tpu.dynamic_rotate %355 by %c64_i32_127 dim 1 : vector<8x128xf32>, i32 -> vector<8x128xf32>
    %c32_i32_128 = arith.constant 32 : i32
    %358 = tpu.dynamic_rotate %355 by %c32_i32_128 dim 1 : vector<8x128xf32>, i32 -> vector<8x128xf32>
    %359 = arith.mulf %356, %316 : vector<8x128xf32>
    %360 = arith.mulf %355, %357 : vector<8x128xf32>
    %361 = arith.addf %359, %360 : vector<8x128xf32>
    %362 = math.tanh %361 : vector<8x128xf32>
    %363 = arith.mulf %358, %362 : vector<8x128xf32>
    %364 = arith.index_cast %345 : i32 to index
    %c0_129 = arith.constant 0 : index
    %365 = vector.load %arg4[%364, %c0_129] : memref<64x256xf32, #tpu.memory_space<vmem>>, vector<8x128xf32>
    tpu.vector_store %arg4[%364, %c0_129], %363 {strides = array<i32>} : memref<64x256xf32, #tpu.memory_space<vmem>>, vector<8x128xf32>,
    %c7_i32_130 = arith.constant 7 : i32
    %366 = arith.subi %c7_i32_130, %c7_i32_122 : i32
    %c8_i32_131 = arith.constant 8 : i32
    %367 = arith.muli %366, %c8_i32_131 : i32
    %368 = tpu.assume_multiple %367, 8 : i32
    %369 = arith.index_cast %368 : i32 to index
    %c128_132 = arith.constant 128 : index
    %370 = vector.load %arg6[%369, %c128_132] : memref<64x256xf32, #tpu.memory_space<vmem>>, vector<8x128xf32>
    %371 = arith.truncf %341 : vector<8x128xf32> to vector<8x128xbf16>
    %cst_133 = arith.constant dense<0.000000e+00> : vector<8x128xf32>
    %372 = tpu.matmul %371, %7, %cst_133 {dimension_numbers = #tpu.dot_dimension_numbers<[1], [0], [0], [1], [0, 0, 1, 1], [], []>} : vector<8x128xbf16>, vector<128x128xbf16>, vector<8x128xf32> -> vector<8x128xf32>
    %373 = arith.addf %370, %372 : vector<8x128xf32>
    %374 = arith.addf %373, %15 : vector<8x128xf32>
    %375 = arith.mulf %374, %24 : vector<8x128xf32>
    %376 = math.tanh %375 : vector<8x128xf32>
    %377 = arith.mulf %376, %24 : vector<8x128xf32>
    %378 = arith.addf %377, %27 : vector<8x128xf32>
    %c96_i32_134 = arith.constant 96 : i32
    %379 = tpu.dynamic_rotate %378 by %c96_i32_134 dim 1 : vector<8x128xf32>, i32 -> vector<8x128xf32>
    %c64_i32_135 = arith.constant 64 : i32
    %380 = tpu.dynamic_rotate %378 by %c64_i32_135 dim 1 : vector<8x128xf32>, i32 -> vector<8x128xf32>
    %c32_i32_136 = arith.constant 32 : i32
    %381 = tpu.dynamic_rotate %378 by %c32_i32_136 dim 1 : vector<8x128xf32>, i32 -> vector<8x128xf32>
    %382 = arith.mulf %379, %339 : vector<8x128xf32>
    %383 = arith.mulf %378, %380 : vector<8x128xf32>
    %384 = arith.addf %382, %383 : vector<8x128xf32>
    %385 = math.tanh %384 : vector<8x128xf32>
    %386 = arith.mulf %381, %385 : vector<8x128xf32>
    %387 = arith.index_cast %368 : i32 to index
    %c128_137 = arith.constant 128 : index
    %388 = vector.load %arg4[%387, %c128_137] : memref<64x256xf32, #tpu.memory_space<vmem>>, vector<8x128xf32>
    tpu.vector_store %arg4[%387, %c128_137], %386 {strides = array<i32>} : memref<64x256xf32, #tpu.memory_space<vmem>>, vector<8x128xf32>,
    %c8_i32_138 = arith.constant 8 : i32
    %c0_139 = arith.constant 0 : index
    %c0_140 = arith.constant 0 : index
    %c0_141 = arith.constant 0 : index
    %389 = vector.load %arg5[%c0_139, %c0_140, %c0_141] : memref<2x8x128xf32, #tpu.memory_space<vmem>>, vector<1x8x128xf32>
    %390 = vector.shape_cast %389 : vector<1x8x128xf32> to vector<8x128xf32>
    %391 = vector.shape_cast %363 : vector<8x128xf32> to vector<1x8x128xf32>
    tpu.vector_store %arg5[%c0_139, %c0_140, %c0_141], %391 {strides = array<i32>} : memref<2x8x128xf32, #tpu.memory_space<vmem>>, vector<1x8x128xf32>,
    %c1_142 = arith.constant 1 : index
    %c0_143 = arith.constant 0 : index
    %c0_144 = arith.constant 0 : index
    %392 = vector.load %arg5[%c1_142, %c0_143, %c0_144] : memref<2x8x128xf32, #tpu.memory_space<vmem>>, vector<1x8x128xf32>
    %393 = vector.shape_cast %392 : vector<1x8x128xf32> to vector<8x128xf32>
    %394 = vector.shape_cast %386 : vector<8x128xf32> to vector<1x8x128xf32>
    tpu.vector_store %arg5[%c1_142, %c0_143, %c0_144], %394 {strides = array<i32>} : memref<2x8x128xf32, #tpu.memory_space<vmem>>, vector<1x8x128xf32>,
    return
  }
}

</mosaic_0001>

<bundles_post_ra>
// kernel: tpu_custom_call.1
= control target key start
LH: loop header
LB: loop body
LE: loop exit
PB: predicated region body
PF: predicated region fallthrough
CT: control target
= control target key end

     0   :  { %11 = vsyncpa [#allocation4], 0  ;;  %s1630_s0 = inlined_call_operand.vmem [shape: bf16[64,16], index: 0, kind: input, shape index: {}]   ;;  %s1631_s1 = inlined_call_operand.vmem [shape: bf16[16,256], index: 1, kind: input, shape index: {}]   ;;  %s1632_s2 = inlined_call_operand.hbm [shape: bf16[2,128,128], index: 2, kind: input, shape index: {}]   ;;  %s1633_s3 = inlined_call_operand.vmem [shape: f32[2,1,128], index: 3, kind: input, shape index: {}]   ;;  %s1634_s4 = inlined_call_operand.hbm [shape: f32[64,256], index: 4, kind: output, shape index: {0}]   ;;  %s1635_s5 = inlined_call_operand.hbm [shape: f32[2,8,128], index: 5, kind: output, shape index: {1}]  }
   0x1   :  { %12 = vsyncpa [#allocation5], 0 }
   0x2   :  { %13 = vsyncpa [#allocation8], 0  ;;  %s22_s20 = sshll.u32 %s1632_s2, 4  ;;  %s1206_s21 = smov [#allocation3]   ;;  %s23_s20 = int_to_ptr.hbm [resolvable:$true] %s22_s20 }
   0x3   :  { %s24_s22 = sshll.u32 %s1206_s21, 4  ;;  %s1207_s23 = smov 64   ;;  %s25_s22 = int_to_ptr.vmem [resolvable:$true] %s24_s22 }
   0x4   :  { %s1208_s24 = smov 4  }
   0x5   :  { %30 = dma.hbm_to_vmem [thread:$0]  %s23_s20, 2048, %s25_s22, [#allocation4], %s1207_s23, %s1207_s23, %s1208_s24  }
   0x6   :  { %1200 = dma.done.wait [#allocation4], 2048  }
   0x7   :  { %1201 = vsyncadd [#allocation4], 4294965248  ;;  %v1031_v0 = vld [vmem:[%s1631_s1 + $0x4] sm:$0xf]  ;;  %v950_v1 = vld [vmem:[%s1631_s1 + $0x8] sm:$0xf0]  ;;  %v207_v30 = vlaneseq }
   0x8   :  { %v1260_v2 = vld [vmem:[#allocation3 + $0x38] sm:$0xff]  ;;  %v953_v3 = vor.u32 %v1031_v0, %v950_v1  ;;  %v1027_v4 = vld [vmem:[%s1630_s0] sm:$0xff]  ;;  %v1266_v5 = vld [vmem:[#allocation3 + $0x30] sm:$0xff]  ;;  %vm78_vm0 = vcmask 130048   ;;  %v1209_v24 = vmov 0   ;;  %v1210_v38 = vmov 0.5  }
   0x9   :  { %266 = vmatpush.bf16.msra.mxu2 %v1260_v2  ;;  %v1268_v6 = vld [vmem:[#allocation3 + $0x78] sm:$0xff]  ;;  %v1271_v7 = vld [vmem:[#allocation3 + $0x70] sm:$0xff]  ;;  %v948_v8 = vld [vmem:[%s1631_s1] sm:$0xf]  ;;  %v208_v32 = vand.u32 127, %v207_v30  ;;  %s1211_s15 = smov 96  }
   0xa   :  { %127 = vmatpush.bf16.msra.mxu1 %v953_v3  ;;  %351 = vmatpush.bf16.msra.mxu3 %v1268_v6  ;;  %v1279_v9 = vld [vmem:[#allocation3 + $0x28] sm:$0xff]  ;;  %v1289_v13 = vld [vmem:[#allocation3 + $0x20] sm:$0xff]  ;;  %v1298_v15 = vld [vmem:[#allocation3 + $0x18] sm:$0xff]  ;;  %s1212_s16 = smov 32   ;;  %s885_s22 = sshll.u32 %s1634_s4, 4  ;;  %s886_s22 = int_to_ptr.hbm [resolvable:$true] %s885_s22 }
   0xb   :  { %v1032_v10 = vld [vmem:[%s1631_s1 + $0x4] sm:$0xf0]  ;;  %v1293_v14 = vld [vmem:[#allocation3 + $0x60] sm:$0xff]  ;;  %v1302_v16 = vld [vmem:[#allocation3 + $0x58] sm:$0xff]  ;;  %vm209_vm1 = vcmp.ge.s32.totalorder %v208_v32, 64  ;;  %vm210_vm2 = vcmp.lt.s32.totalorder %v208_v32, 96 }
   0xc   :  { %v949_v11 = vor.u32 %v1032_v10, %v948_v8  ;;  %v1285_v12 = vld [vmem:[#allocation3 + $0x68] sm:$0xff]  ;;  %v1309_v18 = vld [vmem:[#allocation3 + $0x10] sm:$0xff]  ;;  %v1326_v22 = vld [vmem:[#allocation3] sm:$0xff]  ;;  %s898_s27 = sshll.u32 %s1635_s5, 4  ;;  %s1215_s28 = smov 256   ;;  %s899_s27 = int_to_ptr.hbm [resolvable:$true] %s898_s27 }
   0xd   :  { %958 = vmatmul.msk.bf16.vlgmr.msra.gmra.mxu1 %vm78_vm0, %v1027_v4  ;;  %267 = vmatpush.bf16.msra.mxu2 %v1266_v5  ;;  %v1028_v17 = vld [vmem:[%s1630_s0 + $0x8] sm:$0xff]  ;;  %v1313_v19 = vld [vmem:[#allocation3 + $0x50] sm:$0xff]  ;;  %v1330_v23 = vld [vmem:[#allocation3 + $0x40] sm:$0xff]  ;;  %s1216_s2 = smov 16   ;;  %s1217_s29 = smov 128  }
   0xe   :  { %503 = vmatpush.bf16.msrb.mxu1 %v1268_v6  ;;  %352 = vmatpush.bf16.msra.mxu3 %v1271_v7  ;;  %v1318_v20 = vld [vmem:[#allocation3 + $0x8] sm:$0xff]  ;;  %v1029_v25 = vld [vmem:[%s1630_s0 + $0x10] sm:$0xff]  ;;  %v1030_v26 = vld [vmem:[%s1630_s0 + $0x18] sm:$0xff]  ;;  %s1218_s4 = smov 8  }
   0xf   :  { %98 = vmatpush.bf16.msra.mxu0 %v949_v11  ;;  %v1322_v21 = vld [vmem:[#allocation3 + $0x48] sm:$0xff]  ;;  %v1411_v35 = vld [vmem:[%s1633_s3] ss:$0 sm:$0xff]  ;;  %vm211_vm3 = vmand %vm209_vm1, %vm210_vm2 }
  0x10   :  { %v1413_v39 = vsel %vm211_vm3, 1.0, %v1210_v38  ;;  %v1419_v47 = vsel %vm211_vm3, 0.0, %v1210_v38  ;;  %v1430_v51 = vld [vmem:[%s1633_s3 + $0x1] ss:$0 sm:$0xff]  ;;  %s1213_s3 = smov [#allocation6]  }
  0x11   :  { %268 = vmatpush.bf16.msra.mxu2 %v1279_v9  ;;  %s883_s19 = sshll.u32 %s1213_s3, 4  ;;  %s884_s19 = int_to_ptr.vmem [resolvable:$true] %s883_s19 }
  0x12   :  { %504 = vmatpush.bf16.msrb.mxu1 %v1271_v7  ;;  %353 = vmatpush.bf16.msra.mxu3 %v1285_v12 }
  0x13   :  { %465 = vmatpush.bf16.msrb.mxu0 %v1260_v2 }
  0x14   :  { %954 = vmatmul.msk.bf16.vlgmr.msra.gmra.mxu0 %vm78_vm0, %v1027_v4 }
  0x15   :  { %269 = vmatpush.bf16.msra.mxu2 %v1289_v13 }
  0x16   :  { %505 = vmatpush.bf16.msrb.mxu1 %v1285_v12  ;;  %354 = vmatpush.bf16.msra.mxu3 %v1293_v14 }
  0x17   :  { %466 = vmatpush.bf16.msrb.mxu0 %v1266_v5 }
  0x19   :  { %270 = vmatpush.bf16.msra.mxu2 %v1298_v15 }
  0x1a   :  { %506 = vmatpush.bf16.msrb.mxu1 %v1293_v14  ;;  %355 = vmatpush.bf16.msra.mxu3 %v1302_v16 }
  0x1b   :  { %467 = vmatpush.bf16.msrb.mxu0 %v1279_v9 }
  0x1d   :  { %959 = vmatmul.msk.bf16.gmra.mxu1 %vm78_vm0, %v1028_v17  ;;  %271 = vmatpush.bf16.msra.mxu2 %v1309_v18 }
  0x1e   :  { %507 = vmatpush.bf16.msrb.mxu1 %v1302_v16  ;;  %356 = vmatpush.bf16.msra.mxu3 %v1313_v19 }
  0x1f   :  { %468 = vmatpush.bf16.msrb.mxu0 %v1289_v13 }
  0x21   :  { %272 = vmatpush.bf16.msra.mxu2 %v1318_v20 }
  0x22   :  { %508 = vmatpush.bf16.msrb.mxu1 %v1313_v19  ;;  %357 = vmatpush.bf16.msra.mxu3 %v1322_v21 }
  0x23   :  { %469 = vmatpush.bf16.msrb.mxu0 %v1298_v15 }
  0x24   :  { %955 = vmatmul.msk.bf16.gmra.mxu0 %vm78_vm0, %v1028_v17 }
  0x25   :  { %273 = vmatpush.bf16.msra.mxu2 %v1326_v22 }
  0x26   :  { %509 = vmatpush.bf16.msrb.mxu1 %v1322_v21  ;;  %358 = vmatpush.bf16.msra.mxu3 %v1330_v23 }
  0x27   :  { %470 = vmatpush.bf16.msrb.mxu0 %v1309_v18 }
  0x28   :  { %274 = vmatmul.bf16.vlgmr.msra.gmra.mxu2 %v1209_v24 }
  0x29   :  { %389 = vmatpush.bf16.msrb.mxu2 %v1260_v2  ;;  %359 = vmatmul.bf16.vlgmr.msra.gmra.mxu3 %v1209_v24 }
  0x2a   :  { %427 = vmatpush.bf16.msrb.mxu3 %v1268_v6  ;;  %510 = vmatpush.bf16.msrb.mxu1 %v1330_v23 }
  0x2b   :  { %471 = vmatpush.bf16.msrb.mxu0 %v1318_v20 }
  0x2d   :  { %390 = vmatpush.bf16.msrb.mxu2 %v1266_v5  ;;  %960 = vmatmul.msk.bf16.gmra.mxu1 %vm78_vm0, %v1029_v25 }
  0x2e   :  { %647 = vmatpush.bf16.msra.mxu1 %v1268_v6  ;;  %428 = vmatpush.bf16.msrb.mxu3 %v1271_v7 }
  0x2f   :  { %472 = vmatpush.bf16.msrb.mxu0 %v1326_v22 }
  0x31   :  { %391 = vmatpush.bf16.msrb.mxu2 %v1279_v9 }
  0x32   :  { %648 = vmatpush.bf16.msra.mxu1 %v1271_v7  ;;  %429 = vmatpush.bf16.msrb.mxu3 %v1285_v12 }
  0x33   :  { %614 = vmatpush.bf16.msra.mxu0 %v1260_v2 }
  0x34   :  { %956 = vmatmul.msk.bf16.gmra.mxu0 %vm78_vm0, %v1029_v25 }
  0x35   :  { %392 = vmatpush.bf16.msrb.mxu2 %v1289_v13 }
  0x36   :  { %649 = vmatpush.bf16.msra.mxu1 %v1285_v12  ;;  %430 = vmatpush.bf16.msrb.mxu3 %v1293_v14 }
  0x37   :  { %615 = vmatpush.bf16.msra.mxu0 %v1266_v5 }
  0x39   :  { %393 = vmatpush.bf16.msrb.mxu2 %v1298_v15 }
  0x3a   :  { %650 = vmatpush.bf16.msra.mxu1 %v1293_v14  ;;  %431 = vmatpush.bf16.msrb.mxu3 %v1302_v16 }
  0x3b   :  { %616 = vmatpush.bf16.msra.mxu0 %v1279_v9 }
  0x3d   :  { %394 = vmatpush.bf16.msrb.mxu2 %v1309_v18  ;;  %961 = vmatmul.msk.bf16.gmra.mxu1 %vm78_vm0, %v1030_v26 }
  0x3e   :  { %651 = vmatpush.bf16.msra.mxu1 %v1302_v16  ;;  %432 = vmatpush.bf16.msrb.mxu3 %v1313_v19 }
  0x3f   :  { %617 = vmatpush.bf16.msra.mxu0 %v1289_v13 }
  0x41   :  { %395 = vmatpush.bf16.msrb.mxu2 %v1318_v20 }
  0x42   :  { %652 = vmatpush.bf16.msra.mxu1 %v1313_v19  ;;  %433 = vmatpush.bf16.msrb.mxu3 %v1322_v21 }
  0x43   :  { %618 = vmatpush.bf16.msra.mxu0 %v1298_v15 }
  0x44   :  { %957 = vmatmul.msk.bf16.gmra.mxu0 %vm78_vm0, %v1030_v26 }
  0x45   :  { %396 = vmatpush.bf16.msrb.mxu2 %v1326_v22 }
  0x46   :  { %434 = vmatpush.bf16.msrb.mxu3 %v1330_v23  ;;  %653 = vmatpush.bf16.msra.mxu1 %v1322_v21 }
  0x47   :  { %619 = vmatpush.bf16.msra.mxu0 %v1309_v18 }
  0x49   :  { %541 = vmatpush.bf16.msra.mxu2 %v1260_v2 }
  0x4a   :  { %579 = vmatpush.bf16.msra.mxu3 %v1268_v6  ;;  %654 = vmatpush.bf16.msra.mxu1 %v1330_v23 }
  0x4b   :  { %620 = vmatpush.bf16.msra.mxu0 %v1318_v20 }
  0x4d   :  { %542 = vmatpush.bf16.msra.mxu2 %v1266_v5 }
  0x4e   :  { %580 = vmatpush.bf16.msra.mxu3 %v1271_v7 }
  0x4f   :  { %621 = vmatpush.bf16.msra.mxu0 %v1326_v22 }
  0x51   :  { %543 = vmatpush.bf16.msra.mxu2 %v1279_v9 }
  0x52   :  { %581 = vmatpush.bf16.msra.mxu3 %v1285_v12 }
  0x55   :  { %544 = vmatpush.bf16.msra.mxu2 %v1289_v13 }
  0x56   :  { %582 = vmatpush.bf16.msra.mxu3 %v1293_v14 }
  0x59   :  { %545 = vmatpush.bf16.msra.mxu2 %v1298_v15 }
  0x5a   :  { %583 = vmatpush.bf16.msra.mxu3 %v1302_v16 }
  0x5d   :  { %546 = vmatpush.bf16.msra.mxu2 %v1309_v18 }
  0x5e   :  { %584 = vmatpush.bf16.msra.mxu3 %v1313_v19 }
  0x61   :  { %547 = vmatpush.bf16.msra.mxu2 %v1318_v20 }
  0x62   :  { %585 = vmatpush.bf16.msra.mxu3 %v1322_v21 }
  0x65   :  { %548 = vmatpush.bf16.msra.mxu2 %v1326_v22 }
  0x66   :  { %586 = vmatpush.bf16.msra.mxu3 %v1330_v23 }
  0x8a   :  { %v1398_v27 = vpop.f32.mrf.mxu1 }
  0x91   :  { %v100_v33 = vpop.f32.mrf.mxu0 }
  0x92   :  { %v1400_v28 = vpop.f32.mrf.mxu1 }
  0x9a   :  { %v1402_v29 = vpop.f32.mrf.mxu1 }
  0xa2   :  { %v1404_v31 = vpop.f32.mrf.mxu1 }
  0xaa   :  { %v1406_v34 = vpop.f32.mrf.mxu1 }
  0xab   :  { %v275_v36 = vpop.f32.mrf.mxu2 }
  0xac   :  { %v279_v37 = vadd.f32 %v275_v36, %v100_v33  ;;  %v360_v40 = vpop.f32.mrf.mxu3  ;;  %v102_v33 = vpop.f32.mrf.mxu0 }
  0xae   :  { %v280_v41 = vadd.f32 %v1411_v35, %v279_v37 }
  0xb0   :  { %v281_v42 = vmul.f32 %v280_v41, %v1413_v39 }
  0xb2   :  { %1064 = vtanh.f32 %v281_v42  ;;  %v1417_v43 = vpop.f32.mrf.mxu1 }
  0xb3   :  { %v277_v44 = vpop.f32.mrf.mxu2 }
  0xb4   :  { %v362_v45 = vpop.f32.mrf.mxu3 }
  0xb8   :  { %v1065_v46 = vpop.eup %1064 }
  0xb9   :  { %v283_v48 = vmul.f32 %v1065_v46, %v1413_v39 }
  0xba   :  { %v1422_v49 = vpop.f32.mrf.mxu1 }
  0xbb   :  { %v284_v50 = vadd.f32 %v283_v48, %v1419_v47 }
  0xbd   :  { %285 = vrot.lane.b32.xlu0 %v284_v50, %s1211_s15  ;;  %289 = vrot.lane.b32.xlu2 %v284_v50, %s1212_s16 }
  0xc2   :  { %v146_v52 = vpop.f32.mrf.mxu1 }
  0xc3   :  { %v364_v53 = vadd.f32 %v360_v40, %v146_v52 }
  0xc5   :  { %v365_v54 = vadd.f32 %v1430_v51, %v364_v53  ;;  %287 = vrot.lane.b32.xlu0 %v284_v50, %s1207_s23 }
  0xc7   :  { %v366_v55 = vmul.f32 %v365_v54, %v1413_v39 }
  0xc9   :  { %1066 = vtanh.f32 %v366_v55 }
  0xcf   :  { %v1067_v56 = vpop.eup %1066 }
  0xd0   :  { %v368_v57 = vmul.f32 %v1067_v56, %v1413_v39 }
  0xd2   :  { %v369_v58 = vadd.f32 %v368_v57, %v1419_v47 }
  0xd4   :  { %370 = vrot.lane.b32.xlu1 %v369_v58, %s1211_s15  ;;  %374 = vrot.lane.b32.xlu2 %v369_v58, %s1212_s16 }
  0xdc   :  { %372 = vrot.lane.b32.xlu1 %v369_v58, %s1207_s23 }
 0x117   :  { %v290_v1 = vpop.permute.xlu2 %289 }
 0x12e   :  { %v375_v26 = vpop.permute.xlu2 %374 }
 0x12f   :  { %v286_v59 = vpop.permute.xlu0 %285 }
 0x130   :  { %v291_v60 = vmul.f32 0.0, %v286_v59 }
 0x137   :  { %v288_v61 = vpop.permute.xlu0 %287 }
 0x138   :  { %v292_v62 = vmul.f32 %v288_v61, %v284_v50 }
 0x13a   :  { %v1440_v63 = vadd.f32 %v292_v62, %v291_v60 }
 0x13c   :  { %1068 = vtanh.f32 %v1440_v63 }
 0x142   :  { %v1069_v0 = vpop.eup %1068 }
 0x143   :  { %v295_v3 = vmul.f32 %v1069_v0, %v290_v1 }
 0x145   :  { %298 = vst [vmem:[#allocation6] sm:$0xff] %v295_v3  ;;  %v388_v4 = vpack.c.bf16 %v295_v3, %v295_v3 }
 0x146   :  { %v371_v8 = vpop.permute.xlu1 %370 }
 0x147   :  { %397 = vmatmul.bf16.vlgmr.msrb.gmra.mxu2 %v388_v4  ;;  %v376_v11 = vmul.f32 0.0, %v371_v8 }
 0x148   :  { %680 = vmatpush.bf16.msrb.mxu2 %v1260_v2 }
 0x14c   :  { %681 = vmatpush.bf16.msrb.mxu2 %v1266_v5 }
 0x14e   :  { %v373_v10 = vpop.permute.xlu1 %372 }
 0x14f   :  { %v377_v17 = vmul.f32 %v373_v10, %v369_v58 }
 0x150   :  { %682 = vmatpush.bf16.msrb.mxu2 %v1279_v9 }
 0x151   :  { %v378_v24 = vadd.f32 %v377_v17, %v376_v11 }
 0x153   :  { %1070 = vtanh.f32 %v378_v24 }
 0x154   :  { %683 = vmatpush.bf16.msrb.mxu2 %v1289_v13 }
 0x158   :  { %684 = vmatpush.bf16.msrb.mxu2 %v1298_v15 }
 0x159   :  { %v1071_v25 = vpop.eup %1070 }
 0x15a   :  { %v380_v30 = vmul.f32 %v1071_v25, %v375_v26 }
 0x15c   :  { %383 = vst [vmem:[#allocation6 + $0x78] sm:$0xff] %v380_v30  ;;  %v426_v32 = vpack.c.bf16 %v380_v30, %v380_v30  ;;  %685 = vmatpush.bf16.msrb.mxu2 %v1309_v18 }
 0x15e   :  { %435 = vmatmul.bf16.vlgmr.msrb.gmra.mxu3 %v426_v32 }
 0x15f   :  { %713 = vmatpush.bf16.msrb.mxu3 %v1268_v6 }
 0x160   :  { %686 = vmatpush.bf16.msrb.mxu2 %v1318_v20 }
 0x163   :  { %714 = vmatpush.bf16.msrb.mxu3 %v1271_v7 }
 0x164   :  { %687 = vmatpush.bf16.msrb.mxu2 %v1326_v22 }
 0x167   :  { %715 = vmatpush.bf16.msrb.mxu3 %v1285_v12 }
 0x16b   :  { %716 = vmatpush.bf16.msrb.mxu3 %v1293_v14 }
 0x16f   :  { %717 = vmatpush.bf16.msrb.mxu3 %v1302_v16 }
 0x173   :  { %718 = vmatpush.bf16.msrb.mxu3 %v1313_v19 }
 0x177   :  { %719 = vmatpush.bf16.msrb.mxu3 %v1322_v21 }
 0x17b   :  { %720 = vmatpush.bf16.msrb.mxu3 %v1330_v23 }
 0x1ca   :  { %v398_v36 = vpop.f32.mrf.mxu2 }
 0x1cb   :  { %v402_v37 = vadd.f32 %v398_v36, %v102_v33 }
 0x1cd   :  { %v403_v38 = vadd.f32 %v1411_v35, %v402_v37 }
 0x1cf   :  { %v404_v40 = vmul.f32 %v403_v38, %v1413_v39 }
 0x1d1   :  { %1072 = vtanh.f32 %v404_v40 }
 0x1d2   :  { %v400_v41 = vpop.f32.mrf.mxu2 }
 0x1d7   :  { %v1073_v42 = vpop.eup %1072 }
 0x1d8   :  { %v406_v44 = vmul.f32 %v1073_v42, %v1413_v39 }
 0x1da   :  { %v407_v45 = vadd.f32 %v406_v44, %v1419_v47 }
 0x1dc   :  { %410 = vrot.lane.b32.xlu1 %v407_v45, %s1207_s23  ;;  %408 = vrot.lane.b32.xlu0 %v407_v45, %s1211_s15 }
 0x1e1   :  { %v436_v46 = vpop.f32.mrf.mxu3 }
 0x1e2   :  { %v440_v48 = vadd.f32 %v436_v46, %v1422_v49 }
 0x1e4   :  { %v441_v50 = vadd.f32 %v1430_v51, %v440_v48  ;;  %412 = vrot.lane.b32.xlu1 %v407_v45, %s1212_s16 }
 0x1e6   :  { %v442_v52 = vmul.f32 %v441_v50, %v1413_v39 }
 0x1e8   :  { %1074 = vtanh.f32 %v442_v52 }
 0x1e9   :  { %v438_v53 = vpop.f32.mrf.mxu3 }
 0x1ee   :  { %v1075_v54 = vpop.eup %1074 }
 0x1ef   :  { %v444_v55 = vmul.f32 %v1075_v54, %v1413_v39 }
 0x1f1   :  { %v445_v56 = vadd.f32 %v444_v55, %v1419_v47 }
 0x1f3   :  { %446 = vrot.lane.b32.xlu2 %v445_v56, %s1211_s15  ;;  %448 = vrot.lane.b32.xlu0 %v445_v56, %s1207_s23 }
 0x1fb   :  { %450 = vrot.lane.b32.xlu2 %v445_v56, %s1212_s16 }
 0x24d   :  { %v447_v3 = vpop.permute.xlu2 %446 }
 0x24e   :  { %v411_v49 = vpop.permute.xlu1 %410  ;;  %v409_v57 = vpop.permute.xlu0 %408  ;;  %v452_v8 = vmul.f32 %v447_v3, %v378_v24 }
 0x24f   :  { %v415_v58 = vmul.f32 %v411_v49, %v407_v45  ;;  %v414_v59 = vmul.f32 %v409_v57, %v1440_v63  ;;  %v105_v24 = vpop.f32.mrf.mxu0 }
 0x251   :  { %v1475_v60 = vadd.f32 %v415_v58, %v414_v59 }
 0x253   :  { %1076 = vtanh.f32 %v1475_v60 }
 0x255   :  { %v451_v17 = vpop.permute.xlu2 %450 }
 0x256   :  { %v413_v62 = vpop.permute.xlu1 %412 }
 0x257   :  { %v1497_v30 = vpop.f32.mrf.mxu0 }
 0x259   :  { %v1077_v61 = vpop.eup %1076 }
 0x25a   :  { %v418_v0 = vmul.f32 %v1077_v61, %v413_v62 }
 0x25c   :  { %421 = vst [vmem:[#allocation6 + $0x10] sm:$0xff] %v418_v0  ;;  %v464_v1 = vpack.c.bf16 %v418_v0, %v418_v0 }
 0x25e   :  { %473 = vmatmul.bf16.vlgmr.msrb.gmra.mxu0 %v464_v1 }
 0x25f   :  { %746 = vmatpush.bf16.msrb.mxu0 %v1260_v2  ;;  %v1499_v32 = vpop.f32.mrf.mxu0 }
 0x263   :  { %747 = vmatpush.bf16.msrb.mxu0 %v1266_v5 }
 0x265   :  { %v449_v4 = vpop.permute.xlu0 %448 }
 0x266   :  { %v453_v10 = vmul.f32 %v449_v4, %v445_v56 }
 0x267   :  { %748 = vmatpush.bf16.msrb.mxu0 %v1279_v9  ;;  %v1501_v33 = vpop.f32.mrf.mxu0 }
 0x268   :  { %v1481_v63 = vadd.f32 %v453_v10, %v452_v8 }
 0x26a   :  { %1078 = vtanh.f32 %v1481_v63 }
 0x26b   :  { %749 = vmatpush.bf16.msrb.mxu0 %v1289_v13 }
 0x26f   :  { %750 = vmatpush.bf16.msrb.mxu0 %v1298_v15  ;;  %v1503_v36 = vpop.f32.mrf.mxu0 }
 0x270   :  { %v1079_v11 = vpop.eup %1078 }
 0x271   :  { %v456_v25 = vmul.f32 %v1079_v11, %v451_v17 }
 0x273   :  { %459 = vst [vmem:[#allocation6 + $0x68] sm:$0xff] %v456_v25  ;;  %v502_v26 = vpack.c.bf16 %v456_v25, %v456_v25  ;;  %751 = vmatpush.bf16.msrb.mxu0 %v1309_v18 }
 0x275   :  { %511 = vmatmul.bf16.vlgmr.msrb.gmra.mxu1 %v502_v26 }
 0x276   :  { %779 = vmatpush.bf16.msrb.mxu1 %v1268_v6 }
 0x277   :  { %752 = vmatpush.bf16.msrb.mxu0 %v1318_v20  ;;  %v1505_v37 = vpop.f32.mrf.mxu0 }
 0x27a   :  { %780 = vmatpush.bf16.msrb.mxu1 %v1271_v7 }
 0x27b   :  { %753 = vmatpush.bf16.msrb.mxu0 %v1326_v22 }
 0x27e   :  { %781 = vmatpush.bf16.msrb.mxu1 %v1285_v12 }
 0x282   :  { %782 = vmatpush.bf16.msrb.mxu1 %v1293_v14 }
 0x286   :  { %783 = vmatpush.bf16.msrb.mxu1 %v1302_v16 }
 0x28a   :  { %784 = vmatpush.bf16.msrb.mxu1 %v1313_v19 }
 0x28e   :  { %785 = vmatpush.bf16.msrb.mxu1 %v1322_v21 }
 0x292   :  { %786 = vmatpush.bf16.msrb.mxu1 %v1330_v23 }
 0x2db   :  { %v474_v38 = vpop.f32.mrf.mxu0 }
 0x2dc   :  { %v478_v40 = vadd.f32 %v474_v38, %v105_v24 }
 0x2de   :  { %v479_v41 = vadd.f32 %v1411_v35, %v478_v40 }
 0x2e0   :  { %v480_v42 = vmul.f32 %v479_v41, %v1413_v39 }
 0x2e2   :  { %1080 = vtanh.f32 %v480_v42 }
 0x2e3   :  { %v476_v44 = vpop.f32.mrf.mxu0 }
 0x2e8   :  { %v1081_v45 = vpop.eup %1080 }
 0x2e9   :  { %v482_v46 = vmul.f32 %v1081_v45, %v1413_v39 }
 0x2eb   :  { %v483_v48 = vadd.f32 %v482_v46, %v1419_v47 }
 0x2ed   :  { %486 = vrot.lane.b32.xlu1 %v483_v48, %s1207_s23  ;;  %484 = vrot.lane.b32.xlu0 %v483_v48, %s1211_s15 }
 0x2f2   :  { %v512_v50 = vpop.f32.mrf.mxu1 }
 0x2f3   :  { %v516_v52 = vadd.f32 %v512_v50, %v1417_v43 }
 0x2f5   :  { %v517_v53 = vadd.f32 %v1430_v51, %v516_v52  ;;  %488 = vrot.lane.b32.xlu1 %v483_v48, %s1212_s16 }
 0x2f7   :  { %v518_v54 = vmul.f32 %v517_v53, %v1413_v39 }
 0x2f9   :  { %1082 = vtanh.f32 %v518_v54 }
 0x2fa   :  { %v514_v55 = vpop.f32.mrf.mxu1 }
 0x2ff   :  { %v1083_v56 = vpop.eup %1082 }
 0x300   :  { %v520_v49 = vmul.f32 %v1083_v56, %v1413_v39 }
 0x302   :  { %v521_v57 = vadd.f32 %v520_v49, %v1419_v47 }
 0x304   :  { %522 = vrot.lane.b32.xlu2 %v521_v57, %s1211_s15  ;;  %524 = vrot.lane.b32.xlu0 %v521_v57, %s1207_s23 }
 0x30c   :  { %526 = vrot.lane.b32.xlu2 %v521_v57, %s1212_s16 }
 0x35e   :  { %v523_v8 = vpop.permute.xlu2 %522 }
 0x35f   :  { %v487_v43 = vpop.permute.xlu1 %486  ;;  %v485_v58 = vpop.permute.xlu0 %484  ;;  %v528_v11 = vmul.f32 %v523_v8, %v1481_v63 }
 0x360   :  { %v491_v59 = vmul.f32 %v487_v43, %v483_v48  ;;  %v490_v61 = vmul.f32 %v485_v58, %v1475_v60 }
 0x362   :  { %v1523_v62 = vadd.f32 %v491_v59, %v490_v61 }
 0x364   :  { %1084 = vtanh.f32 %v1523_v62 }
 0x366   :  { %v527_v26 = vpop.permute.xlu2 %526 }
 0x367   :  { %v489_v1 = vpop.permute.xlu1 %488 }
 0x36a   :  { %v1085_v0 = vpop.eup %1084 }
 0x36b   :  { %v494_v3 = vmul.f32 %v1085_v0, %v489_v1 }
 0x36d   :  { %497 = vst [vmem:[#allocation6 + $0x20] sm:$0xff] %v494_v3  ;;  %v540_v4 = vpack.c.bf16 %v494_v3, %v494_v3 }
 0x36f   :  { %549 = vmatmul.bf16.vlgmr.msra.gmra.mxu2 %v540_v4 }
 0x370   :  { %812 = vmatpush.bf16.msra.mxu2 %v1260_v2 }
 0x374   :  { %813 = vmatpush.bf16.msra.mxu2 %v1266_v5 }
 0x376   :  { %v525_v10 = vpop.permute.xlu0 %524 }
 0x377   :  { %v529_v17 = vmul.f32 %v525_v10, %v521_v57 }
 0x378   :  { %814 = vmatpush.bf16.msra.mxu2 %v1279_v9 }
 0x379   :  { %v530_v60 = vadd.f32 %v529_v17, %v528_v11 }
 0x37b   :  { %1086 = vtanh.f32 %v530_v60 }
 0x37c   :  { %815 = vmatpush.bf16.msra.mxu2 %v1289_v13 }
 0x380   :  { %816 = vmatpush.bf16.msra.mxu2 %v1298_v15 }
 0x381   :  { %v1087_v25 = vpop.eup %1086 }
 0x382   :  { %v532_v24 = vmul.f32 %v1087_v25, %v527_v26 }
 0x384   :  { %535 = vst [vmem:[#allocation6 + $0x58] sm:$0xff] %v532_v24  ;;  %v578_v2 = vpack.c.bf16 %v532_v24, %v532_v24  ;;  %817 = vmatpush.bf16.msra.mxu2 %v1309_v18 }
 0x386   :  { %587 = vmatmul.bf16.vlgmr.msra.gmra.mxu3 %v578_v2 }
 0x387   :  { %845 = vmatpush.bf16.msra.mxu3 %v1268_v6 }
 0x388   :  { %818 = vmatpush.bf16.msra.mxu2 %v1318_v20 }
 0x38b   :  { %846 = vmatpush.bf16.msra.mxu3 %v1271_v7 }
 0x38c   :  { %819 = vmatpush.bf16.msra.mxu2 %v1326_v22 }
 0x38f   :  { %847 = vmatpush.bf16.msra.mxu3 %v1285_v12 }
 0x393   :  { %848 = vmatpush.bf16.msra.mxu3 %v1293_v14 }
 0x397   :  { %849 = vmatpush.bf16.msra.mxu3 %v1302_v16 }
 0x39b   :  { %850 = vmatpush.bf16.msra.mxu3 %v1313_v19 }
 0x39f   :  { %851 = vmatpush.bf16.msra.mxu3 %v1322_v21 }
 0x3a3   :  { %852 = vmatpush.bf16.msra.mxu3 %v1330_v23 }
 0x3f2   :  { %v550_v5 = vpop.f32.mrf.mxu2 }
 0x3f3   :  { %v554_v6 = vadd.f32 %v550_v5, %v1497_v30 }
 0x3f5   :  { %v555_v9 = vadd.f32 %v1411_v35, %v554_v6 }
 0x3f7   :  { %v556_v7 = vmul.f32 %v555_v9, %v1413_v39 }
 0x3f9   :  { %1088 = vtanh.f32 %v556_v7 }
 0x3fa   :  { %v552_v13 = vpop.f32.mrf.mxu2 }
 0x3ff   :  { %v1089_v12 = vpop.eup %1088 }
 0x400   :  { %v558_v14 = vmul.f32 %v1089_v12, %v1413_v39 }
 0x402   :  { %v559_v15 = vadd.f32 %v558_v14, %v1419_v47 }
 0x404   :  { %562 = vrot.lane.b32.xlu1 %v559_v15, %s1207_s23  ;;  %560 = vrot.lane.b32.xlu0 %v559_v15, %s1211_s15 }
 0x409   :  { %v588_v16 = vpop.f32.mrf.mxu3 }
 0x40a   :  { %v592_v18 = vadd.f32 %v588_v16, %v1406_v34 }
 0x40c   :  { %v593_v19 = vadd.f32 %v1430_v51, %v592_v18  ;;  %564 = vrot.lane.b32.xlu1 %v559_v15, %s1212_s16 }
 0x40e   :  { %v594_v20 = vmul.f32 %v593_v19, %v1413_v39 }
 0x410   :  { %1090 = vtanh.f32 %v594_v20 }
 0x411   :  { %v590_v21 = vpop.f32.mrf.mxu3 }
 0x416   :  { %v1091_v22 = vpop.eup %1090 }
 0x417   :  { %v596_v23 = vmul.f32 %v1091_v22, %v1413_v39 }
 0x419   :  { %v597_v63 = vadd.f32 %v596_v23, %v1419_v47 }
 0x41b   :  { %600 = vrot.lane.b32.xlu0 %v597_v63, %s1207_s23  ;;  %598 = vrot.lane.b32.xlu2 %v597_v63, %s1211_s15 }
 0x423   :  { %602 = vrot.lane.b32.xlu2 %v597_v63, %s1212_s16 }
 0x475   :  { %v599_v48 = vpop.permute.xlu2 %598 }
 0x476   :  { %v563_v34 = vpop.permute.xlu1 %562  ;;  %v561_v30 = vpop.permute.xlu0 %560  ;;  %v604_v52 = vmul.f32 %v599_v48, %v530_v60 }
 0x477   :  { %v567_v38 = vmul.f32 %v563_v34, %v559_v15  ;;  %v566_v40 = vmul.f32 %v561_v30, %v1523_v62 }
 0x479   :  { %v568_v41 = vadd.f32 %v567_v38, %v566_v40 }
 0x47b   :  { %1092 = vtanh.f32 %v568_v41 }
 0x47d   :  { %v603_v56 = vpop.permute.xlu2 %602 }
 0x47e   :  { %v565_v44 = vpop.permute.xlu1 %564 }
 0x481   :  { %v1093_v42 = vpop.eup %1092 }
 0x482   :  { %v570_v45 = vmul.f32 %v1093_v42, %v565_v44 }
 0x484   :  { %573 = vst [vmem:[#allocation6 + $0x30] sm:$0xff] %v570_v45  ;;  %v613_v46 = vpack.c.bf16 %v570_v45, %v570_v45 }
 0x486   :  { %622 = vmatmul.bf16.vlgmr.msra.gmra.mxu0 %v613_v46 }
 0x48d   :  { %v601_v50 = vpop.permute.xlu0 %600 }
 0x48e   :  { %v605_v53 = vmul.f32 %v601_v50, %v597_v63 }
 0x490   :  { %v606_v54 = vadd.f32 %v605_v53, %v604_v52 }
 0x492   :  { %1094 = vtanh.f32 %v606_v54 }
 0x498   :  { %v1095_v55 = vpop.eup %1094 }
 0x499   :  { %v608_v49 = vmul.f32 %v1095_v55, %v603_v56 }
 0x49b   :  { %611 = vst [vmem:[#allocation6 + $0x48] sm:$0xff] %v608_v49  ;;  %v646_v57 = vpack.c.bf16 %v608_v49, %v608_v49 }
 0x49d   :  { %655 = vmatmul.bf16.vlgmr.msra.gmra.mxu1 %v646_v57 }
 0x503   :  { %v623_v43 = vpop.f32.mrf.mxu0 }
 0x504   :  { %v627_v58 = vadd.f32 %v623_v43, %v1499_v32 }
 0x506   :  { %v628_v59 = vadd.f32 %v1411_v35, %v627_v58 }
 0x508   :  { %v629_v61 = vmul.f32 %v628_v59, %v1413_v39 }
 0x50a   :  { %1096 = vtanh.f32 %v629_v61 }
 0x50b   :  { %v625_v62 = vpop.f32.mrf.mxu0 }
 0x510   :  { %v1097_v0 = vpop.eup %1096 }
 0x511   :  { %v631_v1 = vmul.f32 %v1097_v0, %v1413_v39 }
 0x513   :  { %v632_v3 = vadd.f32 %v631_v1, %v1419_v47 }
 0x515   :  { %635 = vrot.lane.b32.xlu1 %v632_v3, %s1207_s23  ;;  %633 = vrot.lane.b32.xlu0 %v632_v3, %s1211_s15 }
 0x51a   :  { %v656_v4 = vpop.f32.mrf.mxu1 }
 0x51b   :  { %v660_v8 = vadd.f32 %v656_v4, %v1404_v31 }
 0x51d   :  { %v661_v32 = vadd.f32 %v1430_v51, %v660_v8  ;;  %637 = vrot.lane.b32.xlu1 %v632_v3, %s1212_s16 }
 0x51f   :  { %v662_v10 = vmul.f32 %v661_v32, %v1413_v39 }
 0x521   :  { %1098 = vtanh.f32 %v662_v10 }
 0x522   :  { %v658_v11 = vpop.f32.mrf.mxu1 }
 0x527   :  { %v1099_v17 = vpop.eup %1098 }
 0x528   :  { %v664_v60 = vmul.f32 %v1099_v17, %v1413_v39 }
 0x52a   :  { %v665_v25 = vadd.f32 %v664_v60, %v1419_v47 }
 0x52c   :  { %666 = vrot.lane.b32.xlu2 %v665_v25, %s1211_s15  ;;  %668 = vrot.lane.b32.xlu0 %v665_v25, %s1207_s23 }
 0x534   :  { %670 = vrot.lane.b32.xlu2 %v665_v25, %s1212_s16 }
 0x586   :  { %v667_v12 = vpop.permute.xlu2 %666 }
 0x587   :  { %v636_v31 = vpop.permute.xlu1 %635  ;;  %v634_v26 = vpop.permute.xlu0 %633  ;;  %v672_v15 = vmul.f32 %v667_v12, %v606_v54 }
 0x588   :  { %v640_v24 = vmul.f32 %v636_v31, %v632_v3  ;;  %v639_v2 = vmul.f32 %v634_v26, %v568_v41 }
 0x58a   :  { %v641_v5 = vadd.f32 %v640_v24, %v639_v2 }
 0x58c   :  { %1100 = vtanh.f32 %v641_v5 }
 0x58e   :  { %v671_v20 = vpop.permute.xlu2 %670 }
 0x58f   :  { %v638_v9 = vpop.permute.xlu1 %637 }
 0x592   :  { %v1101_v6 = vpop.eup %1100 }
 0x593   :  { %v643_v7 = vmul.f32 %v1101_v6, %v638_v9 }
 0x595   :  { %644 = vst [vmem:[#allocation6 + $0x40] sm:$0xff] %v643_v7  ;;  %v679_v13 = vpack.c.bf16 %v643_v7, %v643_v7 }
 0x597   :  { %688 = vmatmul.bf16.vlgmr.msrb.gmra.mxu2 %v679_v13 }
 0x59e   :  { %v669_v14 = vpop.permute.xlu0 %668 }
 0x59f   :  { %v673_v16 = vmul.f32 %v669_v14, %v665_v25 }
 0x5a1   :  { %v674_v18 = vadd.f32 %v673_v16, %v672_v15 }
 0x5a3   :  { %1102 = vtanh.f32 %v674_v18 }
 0x5a9   :  { %v1103_v19 = vpop.eup %1102 }
 0x5aa   :  { %v676_v21 = vmul.f32 %v1103_v19, %v671_v20 }
 0x5ac   :  { %677 = vst [vmem:[#allocation6 + $0x38] sm:$0xff] %v676_v21  ;;  %v712_v22 = vpack.c.bf16 %v676_v21, %v676_v21 }
 0x5ae   :  { %721 = vmatmul.bf16.vlgmr.msrb.gmra.mxu3 %v712_v22 }
 0x61a   :  { %v689_v23 = vpop.f32.mrf.mxu2 }
 0x61b   :  { %v693_v63 = vadd.f32 %v689_v23, %v1501_v33 }
 0x61d   :  { %v694_v34 = vadd.f32 %v1411_v35, %v693_v63 }
 0x61f   :  { %v695_v30 = vmul.f32 %v694_v34, %v1413_v39 }
 0x621   :  { %1104 = vtanh.f32 %v695_v30 }
 0x622   :  { %v691_v38 = vpop.f32.mrf.mxu2 }
 0x627   :  { %v1105_v40 = vpop.eup %1104 }
 0x628   :  { %v697_v41 = vmul.f32 %v1105_v40, %v1413_v39 }
 0x62a   :  { %v698_v42 = vadd.f32 %v697_v41, %v1419_v47 }
 0x62c   :  { %701 = vrot.lane.b32.xlu1 %v698_v42, %s1207_s23  ;;  %699 = vrot.lane.b32.xlu0 %v698_v42, %s1211_s15 }
 0x631   :  { %v722_v44 = vpop.f32.mrf.mxu3 }
 0x632   :  { %v726_v45 = vadd.f32 %v722_v44, %v1402_v29 }
 0x634   :  { %v727_v33 = vadd.f32 %v1430_v51, %v726_v45  ;;  %703 = vrot.lane.b32.xlu1 %v698_v42, %s1212_s16 }
 0x636   :  { %v728_v46 = vmul.f32 %v727_v33, %v1413_v39 }
 0x638   :  { %1106 = vtanh.f32 %v728_v46 }
 0x639   :  { %v724_v48 = vpop.f32.mrf.mxu3 }
 0x63e   :  { %v1107_v50 = vpop.eup %1106 }
 0x63f   :  { %v730_v52 = vmul.f32 %v1107_v50, %v1413_v39 }
 0x641   :  { %v731_v53 = vadd.f32 %v730_v52, %v1419_v47 }
 0x643   :  { %734 = vrot.lane.b32.xlu0 %v731_v53, %s1207_s23  ;;  %732 = vrot.lane.b32.xlu2 %v731_v53, %s1211_s15 }
 0x64b   :  { %736 = vrot.lane.b32.xlu2 %v731_v53, %s1212_s16 }
 0x69d   :  { %v733_v61 = vpop.permute.xlu2 %732 }
 0x69e   :  { %v702_v29 = vpop.permute.xlu1 %701  ;;  %v700_v54 = vpop.permute.xlu0 %699  ;;  %v738_v0 = vmul.f32 %v733_v61, %v674_v18 }
 0x69f   :  { %v706_v55 = vmul.f32 %v702_v29, %v698_v42  ;;  %v705_v56 = vmul.f32 %v700_v54, %v641_v5 }
 0x6a1   :  { %v707_v49 = vadd.f32 %v706_v55, %v705_v56 }
 0x6a3   :  { %1108 = vtanh.f32 %v707_v49 }
 0x6a5   :  { %v737_v8 = vpop.permute.xlu2 %736 }
 0x6a6   :  { %v704_v43 = vpop.permute.xlu1 %703 }
 0x6a9   :  { %v1109_v57 = vpop.eup %1108 }
 0x6aa   :  { %v709_v58 = vmul.f32 %v1109_v57, %v704_v43 }
 0x6ac   :  { %710 = vst [vmem:[#allocation6 + $0x50] sm:$0xff] %v709_v58  ;;  %v745_v59 = vpack.c.bf16 %v709_v58, %v709_v58 }
 0x6ae   :  { %754 = vmatmul.bf16.vlgmr.msrb.gmra.mxu0 %v745_v59 }
 0x6b5   :  { %v735_v62 = vpop.permute.xlu0 %734 }
 0x6b6   :  { %v739_v1 = vmul.f32 %v735_v62, %v731_v53 }
 0x6b8   :  { %v740_v3 = vadd.f32 %v739_v1, %v738_v0 }
 0x6ba   :  { %1110 = vtanh.f32 %v740_v3 }
 0x6c0   :  { %v1111_v4 = vpop.eup %1110 }
 0x6c1   :  { %v742_v32 = vmul.f32 %v1111_v4, %v737_v8 }
 0x6c3   :  { %743 = vst [vmem:[#allocation6 + $0x28] sm:$0xff] %v742_v32  ;;  %v778_v10 = vpack.c.bf16 %v742_v32, %v742_v32 }
 0x6c5   :  { %787 = vmatmul.bf16.vlgmr.msrb.gmra.mxu1 %v778_v10 }
 0x72b   :  { %v755_v11 = vpop.f32.mrf.mxu0 }
 0x72c   :  { %v759_v17 = vadd.f32 %v755_v11, %v1503_v36 }
 0x72e   :  { %v760_v60 = vadd.f32 %v1411_v35, %v759_v17 }
 0x730   :  { %v761_v25 = vmul.f32 %v760_v60, %v1413_v39 }
 0x732   :  { %1112 = vtanh.f32 %v761_v25 }
 0x733   :  { %v757_v31 = vpop.f32.mrf.mxu0 }
 0x738   :  { %v1113_v26 = vpop.eup %1112 }
 0x739   :  { %v763_v24 = vmul.f32 %v1113_v26, %v1413_v39 }
 0x73b   :  { %v764_v2 = vadd.f32 %v763_v24, %v1419_v47 }
 0x73d   :  { %767 = vrot.lane.b32.xlu1 %v764_v2, %s1207_s23  ;;  %765 = vrot.lane.b32.xlu0 %v764_v2, %s1211_s15 }
 0x742   :  { %v788_v5 = vpop.f32.mrf.mxu1 }
 0x743   :  { %v792_v6 = vadd.f32 %v788_v5, %v1400_v28 }
 0x745   :  { %v793_v36 = vadd.f32 %v1430_v51, %v792_v6  ;;  %769 = vrot.lane.b32.xlu1 %v764_v2, %s1212_s16 }
 0x747   :  { %v794_v9 = vmul.f32 %v793_v36, %v1413_v39 }
 0x749   :  { %1114 = vtanh.f32 %v794_v9 }
 0x74a   :  { %v790_v7 = vpop.f32.mrf.mxu1 }
 0x74f   :  { %v1115_v13 = vpop.eup %1114 }
 0x750   :  { %v796_v12 = vmul.f32 %v1115_v13, %v1413_v39 }
 0x752   :  { %v797_v14 = vadd.f32 %v796_v12, %v1419_v47 }
 0x754   :  { %798 = vrot.lane.b32.xlu2 %v797_v14, %s1211_s15  ;;  %800 = vrot.lane.b32.xlu0 %v797_v14, %s1207_s23 }
 0x75c   :  { %802 = vrot.lane.b32.xlu2 %v797_v14, %s1212_s16 }
 0x7ae   :  { %v799_v63 = vpop.permute.xlu2 %798 }
 0x7af   :  { %v768_v28 = vpop.permute.xlu1 %767  ;;  %v766_v15 = vpop.permute.xlu0 %765  ;;  %v804_v30 = vmul.f32 %v799_v63, %v740_v3 }
 0x7b0   :  { %v772_v16 = vmul.f32 %v768_v28, %v764_v2  ;;  %v771_v18 = vmul.f32 %v766_v15, %v707_v49 }
 0x7b2   :  { %v773_v19 = vadd.f32 %v772_v16, %v771_v18 }
 0x7b4   :  { %1116 = vtanh.f32 %v773_v19 }
 0x7b6   :  { %v803_v42 = vpop.permute.xlu2 %802 }
 0x7b7   :  { %v770_v21 = vpop.permute.xlu1 %769 }
 0x7ba   :  { %v1117_v20 = vpop.eup %1116 }
 0x7bb   :  { %v775_v22 = vmul.f32 %v1117_v20, %v770_v21 }
 0x7bd   :  { %776 = vst [vmem:[#allocation6 + $0x60] sm:$0xff] %v775_v22  ;;  %v811_v23 = vpack.c.bf16 %v775_v22, %v775_v22 }
 0x7bf   :  { %820 = vmatmul.bf16.vlgmr.msra.gmra.mxu2 %v811_v23 }
 0x7c6   :  { %v801_v34 = vpop.permute.xlu0 %800 }
 0x7c7   :  { %v805_v38 = vmul.f32 %v801_v34, %v797_v14 }
 0x7c9   :  { %v806_v40 = vadd.f32 %v805_v38, %v804_v30 }
 0x7cb   :  { %1118 = vtanh.f32 %v806_v40 }
 0x7d1   :  { %v1119_v41 = vpop.eup %1118 }
 0x7d2   :  { %v808_v44 = vmul.f32 %v1119_v41, %v803_v42 }
 0x7d4   :  { %809 = vst [vmem:[#allocation6 + $0x18] sm:$0xff] %v808_v44  ;;  %v844_v45 = vpack.c.bf16 %v808_v44, %v808_v44 }
 0x7d6   :  { %853 = vmatmul.bf16.vlgmr.msra.gmra.mxu3 %v844_v45 }
 0x842   :  { %v821_v33 = vpop.f32.mrf.mxu2 }
 0x843   :  { %v825_v46 = vadd.f32 %v821_v33, %v1505_v37 }
 0x845   :  { %v826_v48 = vadd.f32 %v1411_v35, %v825_v46 }
 0x847   :  { %v827_v50 = vmul.f32 %v826_v48, %v1413_v39 }
 0x849   :  { %1120 = vtanh.f32 %v827_v50 }
 0x84a   :  { %v823_v52 = vpop.f32.mrf.mxu2 }
 0x84f   :  { %v1121_v53 = vpop.eup %1120 }
 0x850   :  { %v829_v29 = vmul.f32 %v1121_v53, %v1413_v39 }
 0x852   :  { %v830_v54 = vadd.f32 %v829_v29, %v1419_v47 }
 0x854   :  { %833 = vrot.lane.b32.xlu1 %v830_v54, %s1207_s23  ;;  %831 = vrot.lane.b32.xlu0 %v830_v54, %s1211_s15 }
 0x859   :  { %v854_v55 = vpop.f32.mrf.mxu3 }
 0x85a   :  { %v858_v56 = vadd.f32 %v854_v55, %v1398_v27 }
 0x85c   :  { %v859_v37 = vadd.f32 %v1430_v51, %v858_v56  ;;  %835 = vrot.lane.b32.xlu1 %v830_v54, %s1212_s16 }
 0x85e   :  { %v860_v35 = vmul.f32 %v859_v37, %v1413_v39 }
 0x860   :  { %1122 = vtanh.f32 %v860_v35 }
 0x861   :  { %v856_v49 = vpop.f32.mrf.mxu3 }
 0x866   :  { %v1123_v57 = vpop.eup %1122 }
 0x867   :  { %v862_v43 = vmul.f32 %v1123_v57, %v1413_v39 }
 0x869   :  { %v863_v58 = vadd.f32 %v862_v43, %v1419_v47 }
 0x86b   :  { %866 = vrot.lane.b32.xlu0 %v863_v58, %s1207_s23  ;;  %864 = vrot.lane.b32.xlu2 %v863_v58, %s1211_s15  ;;  %s1214_s23 = smov [#allocation7]  }
 0x86c   :  { %s896_s24 = sshll.u32 %s1214_s23, 4  ;;  %s897_s24 = int_to_ptr.vmem [resolvable:$true] %s896_s24 }
 0x873   :  { %868 = vrot.lane.b32.xlu2 %v863_v58, %s1212_s16 }
 0x8c5   :  { %v865_v39 = vpop.permute.xlu2 %864 }
 0x8c6   :  { %v834_v27 = vpop.permute.xlu1 %833  ;;  %v832_v59 = vpop.permute.xlu0 %831  ;;  %v870_v47 = vmul.f32 %v865_v39, %v806_v40 }
 0x8c7   :  { %v838_v51 = vmul.f32 %v834_v27, %v830_v54  ;;  %v837_v61 = vmul.f32 %v832_v59, %v773_v19 }
 0x8c9   :  { %v839_v62 = vadd.f32 %v838_v51, %v837_v61 }
 0x8cb   :  { %1124 = vtanh.f32 %v839_v62 }
 0x8cd   :  { %v869_v11 = vpop.permute.xlu2 %868 }
 0x8ce   :  { %v836_v1 = vpop.permute.xlu1 %835 }
 0x8d1   :  { %v1125_v0 = vpop.eup %1124 }
 0x8d2   :  { %v841_v3 = vmul.f32 %v1125_v0, %v836_v1 }
 0x8d4   :  { %842 = vst [vmem:[#allocation6 + $0x70] sm:$0xff] %v841_v3 }
 0x8d5   :  { %876 = vst [vmem:[#allocation7] sm:$0xff] %v841_v3 }
 0x8dd   :  { %v867_v4 = vpop.permute.xlu0 %866 }
 0x8de   :  { %v871_v8 = vmul.f32 %v867_v4, %v863_v58 }
 0x8e0   :  { %v872_v32 = vadd.f32 %v871_v8, %v870_v47 }
 0x8e2   :  { %1126 = vtanh.f32 %v872_v32 }
 0x8e8   :  { %v1127_v10 = vpop.eup %1126 }
 0x8e9   :  { %v874_v17 = vmul.f32 %v1127_v10, %v869_v11 }
 0x8eb   :  { %875 = vst [vmem:[#allocation6 + $0x8] sm:$0xff] %v874_v17 }
 0x8ec   :  { %878 = vst [vmem:[#allocation7 + $0x8] sm:$0xff] %v874_v17  ;;  %891 = dma.vmem_to_hbm [thread:$0]  %s884_s19, 2048, %s886_s22, [#allocation5], %s1215_s28, %s1215_s28, %s1216_s2  }
 0x8ed   :  { %904 = dma.vmem_to_hbm [thread:$0]  %s897_s24, 256, %s899_s27, [#allocation8], %s1217_s29, %s1217_s29, %s1218_s4  }
 0x8ee   :  { %1202 = dma.done.wait [#allocation5], 2048  }
 0x8ef   :  { %1203 = vsyncadd [#allocation5], 4294965248 }
 0x8f0   :  { %1204 = dma.done.wait [#allocation8], 256  }
 0x8f1   :  { %1205 = vsyncadd [#allocation8], 4294967040 }
 0x8f2   :  { %913 = vsyncpa [#allocation4], 1 }
 0x8f3   :  { %914 = vsyncpa [#allocation5], 1 }
 0x8f4   :  { %915 = vsyncpa [#allocation8], 1 }

</bundles_post_ra>
